<compile_context>
chip_gen: v7x
topology: tpu7x:2x2x1
jax: 0.10.0
libtpu: 0.0.40
codegen_flags: <defaults>
</compile_context>

<pallas_src>
import jax
import jax.numpy as jnp
from jax import lax
from jax.experimental import pallas as pl
from jax.experimental.pallas import tpu as pltpu

# ----------------------------- config ---------------------------------------
B, NV, NF = 2, 16, 8          # batch, num vertices, num faces
NC = 9                        # coords per face (3 vertices x 3 coords)
DIM = 32                      # latent dim
HID = 64                      # encoder hidden
CODEBOOK = 64                 # codes per quantizer
NQ = 2                        # residual quantizers
NB = 128                      # discretization bins (lane-dense logits slices)
LANES = 128                   # lane-dense partial-loss output width
GRAD_ACCUM_EVERY = 2
MAX_TM = 512                  # row tile cap (v5e/v6e can go 1024; keep 512 for v7x)


# ------------------------ fused forward kernel -------------------------------
def _fused_mesh_ae_kernel(x_ref, labels_ref, w1_ref, b1_ref, w2_ref, b2_ref,
                          cb_ref, cbt_ref, cbnorm_ref, wd_ref, bd_ref,
                          losses_ref):
    """encode -> residual VQ -> decode -> CE recon loss for one row tile.

    Writes a lane-dense (1, 1, 128) partial-loss vector for this tile:
      lane 0        : sum of per-element cross-entropy (recon) over the tile
      lanes 1..NQ   : per-quantizer sum of ||residual - quantize(residual)||^2
    All normalization / cross-tile reduction happens outside the kernel, so the grid
    axis can be "parallel" (v7x megacore).
    """
    x = x_ref[...]                                                      # (TM, NC) f32
    tm = x.shape[0]

    # ---- encoder MLP (bf16 matmul operands, f32 accumulation, f32 elementwise) ----
    h = jnp.dot(x.astype(jnp.bfloat16), w1_ref[...],
                preferred_element_type=jnp.float32) + b1_ref[...]       # (TM, HID)
    h = jnp.maximum(h, 0.0)
    z = jnp.dot(h.astype(jnp.bfloat16), w2_ref[...],
                preferred_element_type=jnp.float32) + b2_ref[...]       # (TM, DIM)

    # ---- residual vector quantization: all intermediates stay in vregs/VMEM ----
    residual = z
    quantized = jnp.zeros_like(z)
    code_iota = lax.broadcasted_iota(jnp.int32, (tm, CODEBOOK), 1)
    commit_sums = []
    for qi in range(NQ):                                  # static unroll (NQ small)
        # argmin_c |r - e_c|^2 == argmin_c (|e_c|^2 - 2 r.e_c); |r|^2 constant per row.
        # cbt_ref is pre-transposed (NQ, D, C) bf16; cbnorm_ref holds |e_c|^2 (NQ, 1, C) f32.
        rdote = jnp.dot(residual.astype(jnp.bfloat16), cbt_ref[qi],
                        preferred_element_type=jnp.float32)             # (TM, C)
        score = cbnorm_ref[qi] - 2.0 * rdote                            # (TM, C)
        min_s = jnp.min(score, axis=-1, keepdims=True)                  # (TM, 1)
        codes = jnp.min(jnp.where(score <= min_s, code_iota, CODEBOOK),
                        axis=-1, keepdims=True)                         # (TM, 1) argmin
        one_hot = (code_iota == codes).astype(jnp.bfloat16)             # (TM, C)
        q = jnp.dot(one_hot, cb_ref[qi],
                    preferred_element_type=jnp.float32)                 # (TM, D)
        # ||r - e||^2 summed == sum(||r||^2) + sum(min_s): reuse the argmin score.
        commit_sums.append(jnp.sum(residual * residual) + jnp.sum(min_s))
        quantized = quantized + q
        if qi + 1 < NQ:
            residual = residual - q

    # ---- decoder + per-coordinate cross-entropy, bounded logits live range ----
    # One (TM,32)@(32,128) matmul per coordinate keeps only a (TM,128) logits slab live
    # (the fused (TM, NC*NB) f32 logits tensor spilled past the 64-vreg file).
    qbf = quantized.astype(jnp.bfloat16)
    labels = labels_ref[...]                                            # (TM, NC) i32
    bin_iota = lax.broadcasted_iota(jnp.int32, (tm, NB), 1)
    ce_sum = jnp.zeros((), jnp.float32)
    for c in range(NC):                                   # static 128-lane-aligned slices
        lg = jnp.dot(qbf, wd_ref[:, c * NB:(c + 1) * NB],
                     preferred_element_type=jnp.float32) + bd_ref[:, c * NB:(c + 1) * NB]
        m = jnp.max(lg, axis=-1, keepdims=True)
        lse = m + jnp.log(jnp.sum(jnp.exp(lg - m), axis=-1, keepdims=True))
        lab = labels[:, c:c + 1]                                        # (TM, 1)
        tgt = jnp.sum(jnp.where(bin_iota == lab, lg, 0.0), axis=-1, keepdims=True)
        ce_sum = ce_sum + jnp.sum(lse - tgt)

    # ---- single unmasked lane-dense store of this tile's partial losses ----
    lane = lax.broadcasted_iota(jnp.int32, (1, 1, LANES), 2)
    out_vec = jnp.where(lane == 0, ce_sum, jnp.float32(0.0))
    for qi in range(NQ):
        out_vec = jnp.where(lane == (qi + 1), commit_sums[qi], out_vec)
    losses_ref[...] = out_vec


def fused_mesh_ae_forward(x, labels, params):
    """Returns (recon_loss scalar, commit_loss (NQ,)) from one fused Pallas call."""
    M = x.shape[0]
    TM = M if M <= MAX_TM else MAX_TM     # big row tiles: per-step overhead amortized
    assert M % TM == 0, "row count must be a multiple of the row tile"
    num_tiles = M // TM

    # Host-side, grid-invariant precompute: bf16 matmul operands, codebook transpose,
    # and |e_c|^2.  Elementwise math inside the kernel stays f32.
    w1 = params["w1"].astype(jnp.bfloat16)
    w2 = params["w2"].astype(jnp.bfloat16)
    wd = params["wd"].astype(jnp.bfloat16)
    cb_f32 = params["codebooks"]                                 # (NQ, C, D) f32
    cb = cb_f32.astype(jnp.bfloat16)                             # (NQ, C, D) bf16
    cbt = jnp.swapaxes(cb_f32, 1, 2).astype(jnp.bfloat16)        # (NQ, D, C) bf16
    cbnorm = jnp.sum(cb_f32 * cb_f32, axis=-1)[:, None, :]       # (NQ, 1, C) f32
    b1, b2, bd = params["b1"], params["b2"], params["bd"]

    flops = (2 * M * NC * HID + 2 * M * HID * DIM
             + NQ * (2 * M * DIM * CODEBOOK + 2 * M * CODEBOOK * DIM)
             + 2 * M * DIM * NC * NB)
    transcendentals = M * NC * NB + M * NC
    bytes_accessed = (x.size * 4 + labels.size * 4
                      + w1.size * 2 + b1.size * 4 + w2.size * 2 + b2.size * 4
                      + cb.size * 2 + cbt.size * 2 + cbnorm.size * 4
                      + wd.size * 2 + bd.size * 4
                      + num_tiles * LANES * 4)

    def full(a):
        nd = a.ndim
        return pl.BlockSpec(a.shape, lambda i, _nd=nd: (0,) * _nd)

    # NOTE: the resident weight specs get the default double-buffer; they total <200 KB so
    # the extra buffers are irrelevant next to the x/labels pipeline even on v7x's 64 MiB VMEM.
    partials = pl.pallas_call(
        _fused_mesh_ae_kernel,
        out_shape=jax.ShapeDtypeStruct((num_tiles, 1, LANES), jnp.float32),
        grid=(num_tiles,),
        in_specs=[
            pl.BlockSpec((TM, NC), lambda i: (i, 0)),       # x (row-tiled)
            pl.BlockSpec((TM, NC), lambda i: (i, 0)),       # labels (row-tiled)
            full(w1), full(b1), full(w2), full(b2),         # encoder weights, resident
            full(cb), full(cbt), full(cbnorm),              # codebook artifacts, resident
            full(wd), full(bd),                             # decoder weights, resident
        ],
        out_specs=pl.BlockSpec((1, 1, LANES), lambda i: (i, 0, 0)),
        compiler_params=pltpu.CompilerParams(
            dimension_semantics=("parallel",),              # independent tiles -> megacore OK
            vmem_limit_bytes=32 * 1024 * 1024),             # lift v5e's 16 MiB scoped default
        cost_estimate=pl.CostEstimate(flops=flops, transcendentals=transcendentals,
                                      bytes_accessed=bytes_accessed),
    )(x, labels, w1, b1, w2, b2, cb, cbt, cbnorm, wd, bd)

    # Tiny cross-tile reduction + normalization outside the kernel (keeps the grid parallel).
    recon_loss = jnp.sum(partials[:, 0, 0]) * (1.0 / (M * NC))
    commit_loss = jnp.sum(partials[:, 0, 1:1 + NQ], axis=0) * (1.0 / (M * DIM))
    return recon_loss, commit_loss


# --------------------------- model forward (glue) -----------------------------
def init_params(key):
    ks = jax.random.split(key, 6)
    return dict(
        w1=jax.random.normal(ks[0], (NC, HID), jnp.float32) * 0.1,
        b1=jnp.zeros((1, HID), jnp.float32),
        w2=jax.random.normal(ks[1], (HID, DIM), jnp.float32) * 0.1,
        b2=jnp.zeros((1, DIM), jnp.float32),
        codebooks=jax.random.normal(ks[2], (NQ, CODEBOOK, DIM), jnp.float32) * 0.1,
        wd=jax.random.normal(ks[3], (DIM, NC * NB), jnp.float32) * 0.1,
        bd=jnp.zeros((1, NC * NB), jnp.float32),
    )


def mesh_autoencoder_forward(params, vertices, faces):
    """total_loss, (recon_loss, commit_loss) like model(vertices, faces, return_loss_breakdown=True)."""
    # gather per-face vertex coords: (B, Nf, 3, 3) -> flatten to (M, 9)
    batch_idx = jnp.arange(vertices.shape[0])[:, None, None]
    face_coords = vertices[batch_idx, faces]                       # (B, Nf, 3, 3)
    x = face_coords.reshape(-1, NC).astype(jnp.float32)            # (M, 9)

    # discretized targets for the reconstruction cross-entropy (vertices assumed in [-1, 1])
    labels = jnp.clip(jnp.floor((x + 1.0) * 0.5 * NB), 0, NB - 1).astype(jnp.int32)

    recon_loss, commit_loss = fused_mesh_ae_forward(x, labels, params)
    total_loss = recon_loss + commit_loss.sum()
    return total_loss, (recon_loss, commit_loss)


@jax.jit
def trainer_forward_step(params, vertices, faces):
    """Emulates one optimizer-step of MeshAutoencoderTrainer.forward(): grad_accum_every
    model forwards, each scaled by 1/grad_accum_every.  Under jit the identical forwards
    are CSE'd by XLA, so TPU work is not duplicated (real micro-batch accumulation would
    feed different batches per iteration)."""
    # TODO(synk): backward pass / Adam step / EMA update / DDP no_sync have no Pallas equivalent.
    total_loss = recon_loss = commit_loss = None
    for _ in range(GRAD_ACCUM_EVERY):
        total_loss, (recon_loss, commit_loss) = mesh_autoencoder_forward(params, vertices, faces)
        _scaled_for_backward = total_loss / GRAD_ACCUM_EVERY  # what torch would backprop
    return total_loss, recon_loss, commit_loss


# ------------------------------------ main ------------------------------------
if __name__ == "__main__":
    key = jax.random.PRNGKey(0)
    k_param, k_vert, k_face = jax.random.split(key, 3)

    params = init_params(k_param)
    vertices = jax.random.uniform(k_vert, (B, NV, 3), jnp.float32, minval=-1.0, maxval=1.0)
    faces = jax.random.randint(k_face, (B, NF, 3), 0, NV, dtype=jnp.int32)

    total_loss, recon_loss, commit_loss = trainer_forward_step(params, vertices, faces)
    jax.block_until_ready((total_loss, recon_loss, commit_loss))

    assert total_loss.shape == () and recon_loss.shape == () and commit_loss.shape == (NQ,)
    assert jnp.isfinite(total_loss) and jnp.isfinite(recon_loss) and jnp.all(jnp.isfinite(commit_loss))
    print("KERNEL_OK")
</pallas_src>

<mosaic_0001>
module attributes {stable_mosaic.version = 11 : i64} {
  func.func @_fused_mesh_ae_kernel(%arg0: i32, %arg1: memref<16x9xf32, #tpu.memory_space<vmem>>, %arg2: memref<16x9xi32, #tpu.memory_space<vmem>>, %arg3: memref<9x64xbf16, #tpu.memory_space<vmem>>, %arg4: memref<1x64xf32, #tpu.memory_space<vmem>>, %arg5: memref<64x32xbf16, #tpu.memory_space<vmem>>, %arg6: memref<1x32xf32, #tpu.memory_space<vmem>>, %arg7: memref<2x64x32xbf16, #tpu.memory_space<vmem>>, %arg8: memref<2x32x64xbf16, #tpu.memory_space<vmem>>, %arg9: memref<2x1x64xf32, #tpu.memory_space<vmem>>, %arg10: memref<32x1152xbf16, #tpu.memory_space<vmem>>, %arg11: memref<1x1152xf32, #tpu.memory_space<vmem>>, %arg12: memref<1x1x128xf32, #tpu.memory_space<vmem>>) attributes {dimension_semantics = [#tpu.dimension_semantics<parallel>], iteration_bounds = array<i64: 1>, scalar_prefetch = 0 : i64, scratch_operands = 0 : i64, tpu.core_type = #tpu.core_type<tc>, window_params = [{transform_indices = @transform_0, window_bounds = array<i64: 16, 9>}, {transform_indices = @transform_1, window_bounds = array<i64: 16, 9>}, {pipeline_mode = #tpu.pipeline_mode<synchronous>, transform_indices = @transform_2, window_bounds = array<i64: 9, 64>}, {pipeline_mode = #tpu.pipeline_mode<synchronous>, transform_indices = @transform_3, window_bounds = array<i64: 1, 64>}, {pipeline_mode = #tpu.pipeline_mode<synchronous>, transform_indices = @transform_4, window_bounds = array<i64: 64, 32>}, {pipeline_mode = #tpu.pipeline_mode<synchronous>, transform_indices = @transform_5, window_bounds = array<i64: 1, 32>}, {pipeline_mode = #tpu.pipeline_mode<synchronous>, transform_indices = @transform_6, window_bounds = array<i64: 2, 64, 32>}, {pipeline_mode = #tpu.pipeline_mode<synchronous>, transform_indices = @transform_7, window_bounds = array<i64: 2, 32, 64>}, {pipeline_mode = #tpu.pipeline_mode<synchronous>, transform_indices = @transform_8, window_bounds = array<i64: 2, 1, 64>}, {pipeline_mode = #tpu.pipeline_mode<synchronous>, transform_indices = @transform_9, window_bounds = array<i64: 32, 1152>}, {pipeline_mode = #tpu.pipeline_mode<synchronous>, transform_indices = @transform_10, window_bounds = array<i64: 1, 1152>}, {transform_indices = @transform_11, window_bounds = array<i64: 1, 1, 128>}]} {
    %c0 = arith.constant 0 : index
    %c0_0 = arith.constant 0 : index
    %0 = vector.load %arg1[%c0, %c0_0] : memref<16x9xf32, #tpu.memory_space<vmem>>, vector<16x9xf32>
    %1 = arith.truncf %0 : vector<16x9xf32> to vector<16x9xbf16>
    %c0_1 = arith.constant 0 : index
    %c0_2 = arith.constant 0 : index
    %2 = vector.load %arg3[%c0_1, %c0_2] : memref<9x64xbf16, #tpu.memory_space<vmem>>, vector<9x64xbf16>
    %cst = arith.constant dense<0.000000e+00> : vector<16x64xf32>
    %3 = tpu.matmul %1, %2, %cst {dimension_numbers = #tpu.dot_dimension_numbers<[1], [0], [0], [1], [0, 0, 1, 1], [], []>} : vector<16x9xbf16>, vector<9x64xbf16>, vector<16x64xf32> -> vector<16x64xf32>
    %c0_3 = arith.constant 0 : index
    %c0_4 = arith.constant 0 : index
    %4 = vector.load %arg4[%c0_3, %c0_4] : memref<1x64xf32, #tpu.memory_space<vmem>>, vector<1x64xf32>
    %5 = vector.broadcast %4 : vector<1x64xf32> to vector<16x64xf32>
    %6 = arith.addf %3, %5 : vector<16x64xf32>
    %cst_5 = arith.constant 0.000000e+00 : f32
    %7 = vector.broadcast %cst_5 : f32 to vector<16x64xf32>
    %8 = arith.maximumf %6, %7 : vector<16x64xf32>
    %9 = arith.truncf %8 : vector<16x64xf32> to vector<16x64xbf16>
    %c0_6 = arith.constant 0 : index
    %c0_7 = arith.constant 0 : index
    %10 = vector.load %arg5[%c0_6, %c0_7] : memref<64x32xbf16, #tpu.memory_space<vmem>>, vector<64x32xbf16>
    %cst_8 = arith.constant dense<0.000000e+00> : vector<16x32xf32>
    %11 = tpu.matmul %9, %10, %cst_8 {dimension_numbers = #tpu.dot_dimension_numbers<[1], [0], [0], [1], [0, 0, 1, 1], [], []>} : vector<16x64xbf16>, vector<64x32xbf16>, vector<16x32xf32> -> vector<16x32xf32>
    %c0_9 = arith.constant 0 : index
    %c0_10 = arith.constant 0 : index
    %12 = vector.load %arg6[%c0_9, %c0_10] : memref<1x32xf32, #tpu.memory_space<vmem>>, vector<1x32xf32>
    %13 = vector.broadcast %12 : vector<1x32xf32> to vector<16x32xf32>
    %14 = arith.addf %11, %13 : vector<16x32xf32>
    %cst_11 = arith.constant 0.000000e+00 : f32
    %15 = vector.broadcast %cst_11 : f32 to vector<16x32xf32>
    %16 = tpu.iota {dimensions = array<i32: 1>} : vector<16x64xi32>
    %17 = arith.truncf %14 : vector<16x32xf32> to vector<16x32xbf16>
    %c0_12 = arith.constant 0 : index
    %c0_13 = arith.constant 0 : index
    %c0_14 = arith.constant 0 : index
    %18 = vector.load %arg8[%c0_12, %c0_13, %c0_14] : memref<2x32x64xbf16, #tpu.memory_space<vmem>>, vector<1x32x64xbf16>
    %19 = vector.shape_cast %18 : vector<1x32x64xbf16> to vector<32x64xbf16>
    %cst_15 = arith.constant dense<0.000000e+00> : vector<16x64xf32>
    %20 = tpu.matmul %17, %19, %cst_15 {dimension_numbers = #tpu.dot_dimension_numbers<[1], [0], [0], [1], [0, 0, 1, 1], [], []>} : vector<16x32xbf16>, vector<32x64xbf16>, vector<16x64xf32> -> vector<16x64xf32>
    %c0_16 = arith.constant 0 : index
    %c0_17 = arith.constant 0 : index
    %c0_18 = arith.constant 0 : index
    %21 = vector.load %arg9[%c0_16, %c0_17, %c0_18] : memref<2x1x64xf32, #tpu.memory_space<vmem>>, vector<1x1x64xf32>
    %22 = vector.shape_cast %21 : vector<1x1x64xf32> to vector<1x64xf32>
    %cst_19 = arith.constant 2.000000e+00 : f32
    %23 = vector.broadcast %cst_19 : f32 to vector<16x64xf32>
    %24 = arith.mulf %23, %20 : vector<16x64xf32>
    %25 = vector.broadcast %22 : vector<1x64xf32> to vector<16x64xf32>
    %26 = arith.subf %25, %24 : vector<16x64xf32>
    %cst_20 = arith.constant dense<0x7F800000> : vector<16xf32>
    %27 = vector.multi_reduction <minimumf>, %26, %cst_20 [1] : vector<16x64xf32> to vector<16xf32>
    %28 = vector.shape_cast %27 : vector<16xf32> to vector<16x1xf32>
    %29 = vector.broadcast %28 : vector<16x1xf32> to vector<16x64xf32>
    %30 = arith.cmpf ole, %26, %29 : vector<16x64xf32>
    %c64_i32 = arith.constant 64 : i32
    %31 = vector.broadcast %c64_i32 : i32 to vector<16x64xi32>
    %32 = arith.select %30, %16, %31 : vector<16x64xi1>, vector<16x64xi32>
    %cst_21 = arith.constant dense<2147483647> : vector<16xi32>
    %33 = vector.multi_reduction <minsi>, %32, %cst_21 [1] : vector<16x64xi32> to vector<16xi32>
    %34 = vector.shape_cast %33 : vector<16xi32> to vector<16x1xi32>
    %35 = vector.broadcast %34 : vector<16x1xi32> to vector<16x64xi32>
    %36 = arith.cmpi eq, %16, %35 : vector<16x64xi32>
    %37 = arith.extui %36 : vector<16x64xi1> to vector<16x64xi32>
    %38 = arith.sitofp %37 : vector<16x64xi32> to vector<16x64xf32>
    %39 = arith.truncf %38 : vector<16x64xf32> to vector<16x64xbf16>
    %c0_22 = arith.constant 0 : index
    %c0_23 = arith.constant 0 : index
    %c0_24 = arith.constant 0 : index
    %40 = vector.load %arg7[%c0_22, %c0_23, %c0_24] : memref<2x64x32xbf16, #tpu.memory_space<vmem>>, vector<1x64x32xbf16>
    %41 = vector.shape_cast %40 : vector<1x64x32xbf16> to vector<64x32xbf16>
    %cst_25 = arith.constant dense<0.000000e+00> : vector<16x32xf32>
    %42 = tpu.matmul %39, %41, %cst_25 {dimension_numbers = #tpu.dot_dimension_numbers<[1], [0], [0], [1], [0, 0, 1, 1], [], []>} : vector<16x64xbf16>, vector<64x32xbf16>, vector<16x32xf32> -> vector<16x32xf32>
    %43 = arith.mulf %14, %14 : vector<16x32xf32>
    %44 = vector.shape_cast %43 : vector<16x32xf32> to vector<1x16x32xf32>
    %cst_26 = arith.constant dense<0.000000e+00> : vector<1xf32>
    %45 = vector.multi_reduction <add>, %44, %cst_26 [1, 2] : vector<1x16x32xf32> to vector<1xf32>
    %46 = vector.shape_cast %45 : vector<1xf32> to vector<1x1x1xf32>
    %47 = vector.extract %46[0, 0, 0] : f32 from vector<1x1x1xf32>
    %48 = vector.shape_cast %28 : vector<16x1xf32> to vector<1x16x1xf32>
    %cst_27 = arith.constant dense<0.000000e+00> : vector<1xf32>
    %49 = vector.multi_reduction <add>, %48, %cst_27 [1, 2] : vector<1x16x1xf32> to vector<1xf32>
    %50 = vector.shape_cast %49 : vector<1xf32> to vector<1x1x1xf32>
    %51 = vector.extract %50[0, 0, 0] : f32 from vector<1x1x1xf32>
    %52 = arith.addf %47, %51 : f32
    %53 = arith.addf %15, %42 : vector<16x32xf32>
    %54 = arith.subf %14, %42 : vector<16x32xf32>
    %55 = arith.truncf %54 : vector<16x32xf32> to vector<16x32xbf16>
    %c1 = arith.constant 1 : index
    %c0_28 = arith.constant 0 : index
    %c0_29 = arith.constant 0 : index
    %56 = vector.load %arg8[%c1, %c0_28, %c0_29] : memref<2x32x64xbf16, #tpu.memory_space<vmem>>, vector<1x32x64xbf16>
    %57 = vector.shape_cast %56 : vector<1x32x64xbf16> to vector<32x64xbf16>
    %cst_30 = arith.constant dense<0.000000e+00> : vector<16x64xf32>
    %58 = tpu.matmul %55, %57, %cst_30 {dimension_numbers = #tpu.dot_dimension_numbers<[1], [0], [0], [1], [0, 0, 1, 1], [], []>} : vector<16x32xbf16>, vector<32x64xbf16>, vector<16x64xf32> -> vector<16x64xf32>
    %c1_31 = arith.constant 1 : index
    %c0_32 = arith.constant 0 : index
    %c0_33 = arith.constant 0 : index
    %59 = vector.load %arg9[%c1_31, %c0_32, %c0_33] : memref<2x1x64xf32, #tpu.memory_space<vmem>>, vector<1x1x64xf32>
    %60 = vector.shape_cast %59 : vector<1x1x64xf32> to vector<1x64xf32>
    %cst_34 = arith.constant 2.000000e+00 : f32
    %61 = vector.broadcast %cst_34 : f32 to vector<16x64xf32>
    %62 = arith.mulf %61, %58 : vector<16x64xf32>
    %63 = vector.broadcast %60 : vector<1x64xf32> to vector<16x64xf32>
    %64 = arith.subf %63, %62 : vector<16x64xf32>
    %cst_35 = arith.constant dense<0x7F800000> : vector<16xf32>
    %65 = vector.multi_reduction <minimumf>, %64, %cst_35 [1] : vector<16x64xf32> to vector<16xf32>
    %66 = vector.shape_cast %65 : vector<16xf32> to vector<16x1xf32>
    %67 = vector.broadcast %66 : vector<16x1xf32> to vector<16x64xf32>
    %68 = arith.cmpf ole, %64, %67 : vector<16x64xf32>
    %c64_i32_36 = arith.constant 64 : i32
    %69 = vector.broadcast %c64_i32_36 : i32 to vector<16x64xi32>
    %70 = arith.select %68, %16, %69 : vector<16x64xi1>, vector<16x64xi32>
    %cst_37 = arith.constant dense<2147483647> : vector<16xi32>
    %71 = vector.multi_reduction <minsi>, %70, %cst_37 [1] : vector<16x64xi32> to vector<16xi32>
    %72 = vector.shape_cast %71 : vector<16xi32> to vector<16x1xi32>
    %73 = vector.broadcast %72 : vector<16x1xi32> to vector<16x64xi32>
    %74 = arith.cmpi eq, %16, %73 : vector<16x64xi32>
    %75 = arith.extui %74 : vector<16x64xi1> to vector<16x64xi32>
    %76 = arith.sitofp %75 : vector<16x64xi32> to vector<16x64xf32>
    %77 = arith.truncf %76 : vector<16x64xf32> to vector<16x64xbf16>
    %c1_38 = arith.constant 1 : index
    %c0_39 = arith.constant 0 : index
    %c0_40 = arith.constant 0 : index
    %78 = vector.load %arg7[%c1_38, %c0_39, %c0_40] : memref<2x64x32xbf16, #tpu.memory_space<vmem>>, vector<1x64x32xbf16>
    %79 = vector.shape_cast %78 : vector<1x64x32xbf16> to vector<64x32xbf16>
    %cst_41 = arith.constant dense<0.000000e+00> : vector<16x32xf32>
    %80 = tpu.matmul %77, %79, %cst_41 {dimension_numbers = #tpu.dot_dimension_numbers<[1], [0], [0], [1], [0, 0, 1, 1], [], []>} : vector<16x64xbf16>, vector<64x32xbf16>, vector<16x32xf32> -> vector<16x32xf32>
    %81 = arith.mulf %54, %54 : vector<16x32xf32>
    %82 = vector.shape_cast %81 : vector<16x32xf32> to vector<1x16x32xf32>
    %cst_42 = arith.constant dense<0.000000e+00> : vector<1xf32>
    %83 = vector.multi_reduction <add>, %82, %cst_42 [1, 2] : vector<1x16x32xf32> to vector<1xf32>
    %84 = vector.shape_cast %83 : vector<1xf32> to vector<1x1x1xf32>
    %85 = vector.extract %84[0, 0, 0] : f32 from vector<1x1x1xf32>
    %86 = vector.shape_cast %66 : vector<16x1xf32> to vector<1x16x1xf32>
    %cst_43 = arith.constant dense<0.000000e+00> : vector<1xf32>
    %87 = vector.multi_reduction <add>, %86, %cst_43 [1, 2] : vector<1x16x1xf32> to vector<1xf32>
    %88 = vector.shape_cast %87 : vector<1xf32> to vector<1x1x1xf32>
    %89 = vector.extract %88[0, 0, 0] : f32 from vector<1x1x1xf32>
    %90 = arith.addf %85, %89 : f32
    %91 = arith.addf %53, %80 : vector<16x32xf32>
    %92 = arith.truncf %91 : vector<16x32xf32> to vector<16x32xbf16>
    %c0_44 = arith.constant 0 : index
    %c0_45 = arith.constant 0 : index
    %93 = vector.load %arg2[%c0_44, %c0_45] : memref<16x9xi32, #tpu.memory_space<vmem>>, vector<16x9xi32>
    %94 = tpu.iota {dimensions = array<i32: 1>} : vector<16x128xi32>
    %c0_46 = arith.constant 0 : index
    %c0_47 = arith.constant 0 : index
    %95 = vector.load %arg10[%c0_46, %c0_47] : memref<32x1152xbf16, #tpu.memory_space<vmem>>, vector<32x128xbf16>
    %cst_48 = arith.constant dense<0.000000e+00> : vector<16x128xf32>
    %96 = tpu.matmul %92, %95, %cst_48 {dimension_numbers = #tpu.dot_dimension_numbers<[1], [0], [0], [1], [0, 0, 1, 1], [], []>} : vector<16x32xbf16>, vector<32x128xbf16>, vector<16x128xf32> -> vector<16x128xf32>
    %c0_49 = arith.constant 0 : index
    %c0_50 = arith.constant 0 : index
    %97 = vector.load %arg11[%c0_49, %c0_50] : memref<1x1152xf32, #tpu.memory_space<vmem>>, vector<1x128xf32>
    %98 = vector.broadcast %97 : vector<1x128xf32> to vector<16x128xf32>
    %99 = arith.addf %96, %98 : vector<16x128xf32>
    %cst_51 = arith.constant dense<0xFF800000> : vector<16xf32>
    %100 = vector.multi_reduction <maximumf>, %99, %cst_51 [1] : vector<16x128xf32> to vector<16xf32>
    %101 = vector.shape_cast %100 : vector<16xf32> to vector<16x1xf32>
    %102 = vector.broadcast %101 : vector<16x1xf32> to vector<16x128xf32>
    %103 = arith.subf %99, %102 : vector<16x128xf32>
    %104 = math.exp %103 : vector<16x128xf32>
    %cst_52 = arith.constant dense<0.000000e+00> : vector<16xf32>
    %105 = vector.multi_reduction <add>, %104, %cst_52 [1] : vector<16x128xf32> to vector<16xf32>
    %106 = vector.shape_cast %105 : vector<16xf32> to vector<16x1xf32>
    %107 = math.log %106 : vector<16x1xf32>
    %108 = arith.addf %101, %107 : vector<16x1xf32>
    %109 = vector.extract_strided_slice %93 {offsets = [0, 0], sizes = [16, 1], strides = [1, 1]} : vector<16x9xi32> to vector<16x1xi32>
    %110 = vector.broadcast %109 : vector<16x1xi32> to vector<16x128xi32>
    %111 = arith.cmpi eq, %94, %110 : vector<16x128xi32>
    %cst_53 = arith.constant 0.000000e+00 : f32
    %112 = vector.broadcast %cst_53 : f32 to vector<16x128xf32>
    %113 = arith.select %111, %99, %112 : vector<16x128xi1>, vector<16x128xf32>
    %cst_54 = arith.constant dense<0.000000e+00> : vector<16xf32>
    %114 = vector.multi_reduction <add>, %113, %cst_54 [1] : vector<16x128xf32> to vector<16xf32>
    %115 = vector.shape_cast %114 : vector<16xf32> to vector<16x1xf32>
    %116 = arith.subf %108, %115 : vector<16x1xf32>
    %117 = vector.shape_cast %116 : vector<16x1xf32> to vector<1x16x1xf32>
    %cst_55 = arith.constant dense<0.000000e+00> : vector<1xf32>
    %118 = vector.multi_reduction <add>, %117, %cst_55 [1, 2] : vector<1x16x1xf32> to vector<1xf32>
    %119 = vector.shape_cast %118 : vector<1xf32> to vector<1x1x1xf32>
    %120 = vector.extract %119[0, 0, 0] : f32 from vector<1x1x1xf32>
    %cst_56 = arith.constant 0.000000e+00 : f32
    %121 = arith.addf %cst_56, %120 : f32
    %c0_57 = arith.constant 0 : index
    %c128 = arith.constant 128 : index
    %122 = vector.load %arg10[%c0_57, %c128] : memref<32x1152xbf16, #tpu.memory_space<vmem>>, vector<32x128xbf16>
    %cst_58 = arith.constant dense<0.000000e+00> : vector<16x128xf32>
    %123 = tpu.matmul %92, %122, %cst_58 {dimension_numbers = #tpu.dot_dimension_numbers<[1], [0], [0], [1], [0, 0, 1, 1], [], []>} : vector<16x32xbf16>, vector<32x128xbf16>, vector<16x128xf32> -> vector<16x128xf32>
    %c0_59 = arith.constant 0 : index
    %c128_60 = arith.constant 128 : index
    %124 = vector.load %arg11[%c0_59, %c128_60] : memref<1x1152xf32, #tpu.memory_space<vmem>>, vector<1x128xf32>
    %125 = vector.broadcast %124 : vector<1x128xf32> to vector<16x128xf32>
    %126 = arith.addf %123, %125 : vector<16x128xf32>
    %cst_61 = arith.constant dense<0xFF800000> : vector<16xf32>
    %127 = vector.multi_reduction <maximumf>, %126, %cst_61 [1] : vector<16x128xf32> to vector<16xf32>
    %128 = vector.shape_cast %127 : vector<16xf32> to vector<16x1xf32>
    %129 = vector.broadcast %128 : vector<16x1xf32> to vector<16x128xf32>
    %130 = arith.subf %126, %129 : vector<16x128xf32>
    %131 = math.exp %130 : vector<16x128xf32>
    %cst_62 = arith.constant dense<0.000000e+00> : vector<16xf32>
    %132 = vector.multi_reduction <add>, %131, %cst_62 [1] : vector<16x128xf32> to vector<16xf32>
    %133 = vector.shape_cast %132 : vector<16xf32> to vector<16x1xf32>
    %134 = math.log %133 : vector<16x1xf32>
    %135 = arith.addf %128, %134 : vector<16x1xf32>
    %136 = vector.extract_strided_slice %93 {offsets = [0, 1], sizes = [16, 1], strides = [1, 1]} : vector<16x9xi32> to vector<16x1xi32>
    %137 = vector.broadcast %136 : vector<16x1xi32> to vector<16x128xi32>
    %138 = arith.cmpi eq, %94, %137 : vector<16x128xi32>
    %cst_63 = arith.constant 0.000000e+00 : f32
    %139 = vector.broadcast %cst_63 : f32 to vector<16x128xf32>
    %140 = arith.select %138, %126, %139 : vector<16x128xi1>, vector<16x128xf32>
    %cst_64 = arith.constant dense<0.000000e+00> : vector<16xf32>
    %141 = vector.multi_reduction <add>, %140, %cst_64 [1] : vector<16x128xf32> to vector<16xf32>
    %142 = vector.shape_cast %141 : vector<16xf32> to vector<16x1xf32>
    %143 = arith.subf %135, %142 : vector<16x1xf32>
    %144 = vector.shape_cast %143 : vector<16x1xf32> to vector<1x16x1xf32>
    %cst_65 = arith.constant dense<0.000000e+00> : vector<1xf32>
    %145 = vector.multi_reduction <add>, %144, %cst_65 [1, 2] : vector<1x16x1xf32> to vector<1xf32>
    %146 = vector.shape_cast %145 : vector<1xf32> to vector<1x1x1xf32>
    %147 = vector.extract %146[0, 0, 0] : f32 from vector<1x1x1xf32>
    %148 = arith.addf %121, %147 : f32
    %c0_66 = arith.constant 0 : index
    %c256 = arith.constant 256 : index
    %149 = vector.load %arg10[%c0_66, %c256] : memref<32x1152xbf16, #tpu.memory_space<vmem>>, vector<32x128xbf16>
    %cst_67 = arith.constant dense<0.000000e+00> : vector<16x128xf32>
    %150 = tpu.matmul %92, %149, %cst_67 {dimension_numbers = #tpu.dot_dimension_numbers<[1], [0], [0], [1], [0, 0, 1, 1], [], []>} : vector<16x32xbf16>, vector<32x128xbf16>, vector<16x128xf32> -> vector<16x128xf32>
    %c0_68 = arith.constant 0 : index
    %c256_69 = arith.constant 256 : index
    %151 = vector.load %arg11[%c0_68, %c256_69] : memref<1x1152xf32, #tpu.memory_space<vmem>>, vector<1x128xf32>
    %152 = vector.broadcast %151 : vector<1x128xf32> to vector<16x128xf32>
    %153 = arith.addf %150, %152 : vector<16x128xf32>
    %cst_70 = arith.constant dense<0xFF800000> : vector<16xf32>
    %154 = vector.multi_reduction <maximumf>, %153, %cst_70 [1] : vector<16x128xf32> to vector<16xf32>
    %155 = vector.shape_cast %154 : vector<16xf32> to vector<16x1xf32>
    %156 = vector.broadcast %155 : vector<16x1xf32> to vector<16x128xf32>
    %157 = arith.subf %153, %156 : vector<16x128xf32>
    %158 = math.exp %157 : vector<16x128xf32>
    %cst_71 = arith.constant dense<0.000000e+00> : vector<16xf32>
    %159 = vector.multi_reduction <add>, %158, %cst_71 [1] : vector<16x128xf32> to vector<16xf32>
    %160 = vector.shape_cast %159 : vector<16xf32> to vector<16x1xf32>
    %161 = math.log %160 : vector<16x1xf32>
    %162 = arith.addf %155, %161 : vector<16x1xf32>
    %163 = vector.extract_strided_slice %93 {offsets = [0, 2], sizes = [16, 1], strides = [1, 1]} : vector<16x9xi32> to vector<16x1xi32>
    %164 = vector.broadcast %163 : vector<16x1xi32> to vector<16x128xi32>
    %165 = arith.cmpi eq, %94, %164 : vector<16x128xi32>
    %cst_72 = arith.constant 0.000000e+00 : f32
    %166 = vector.broadcast %cst_72 : f32 to vector<16x128xf32>
    %167 = arith.select %165, %153, %166 : vector<16x128xi1>, vector<16x128xf32>
    %cst_73 = arith.constant dense<0.000000e+00> : vector<16xf32>
    %168 = vector.multi_reduction <add>, %167, %cst_73 [1] : vector<16x128xf32> to vector<16xf32>
    %169 = vector.shape_cast %168 : vector<16xf32> to vector<16x1xf32>
    %170 = arith.subf %162, %169 : vector<16x1xf32>
    %171 = vector.shape_cast %170 : vector<16x1xf32> to vector<1x16x1xf32>
    %cst_74 = arith.constant dense<0.000000e+00> : vector<1xf32>
    %172 = vector.multi_reduction <add>, %171, %cst_74 [1, 2] : vector<1x16x1xf32> to vector<1xf32>
    %173 = vector.shape_cast %172 : vector<1xf32> to vector<1x1x1xf32>
    %174 = vector.extract %173[0, 0, 0] : f32 from vector<1x1x1xf32>
    %175 = arith.addf %148, %174 : f32
    %c0_75 = arith.constant 0 : index
    %c384 = arith.constant 384 : index
    %176 = vector.load %arg10[%c0_75, %c384] : memref<32x1152xbf16, #tpu.memory_space<vmem>>, vector<32x128xbf16>
    %cst_76 = arith.constant dense<0.000000e+00> : vector<16x128xf32>
    %177 = tpu.matmul %92, %176, %cst_76 {dimension_numbers = #tpu.dot_dimension_numbers<[1], [0], [0], [1], [0, 0, 1, 1], [], []>} : vector<16x32xbf16>, vector<32x128xbf16>, vector<16x128xf32> -> vector<16x128xf32>
    %c0_77 = arith.constant 0 : index
    %c384_78 = arith.constant 384 : index
    %178 = vector.load %arg11[%c0_77, %c384_78] : memref<1x1152xf32, #tpu.memory_space<vmem>>, vector<1x128xf32>
    %179 = vector.broadcast %178 : vector<1x128xf32> to vector<16x128xf32>
    %180 = arith.addf %177, %179 : vector<16x128xf32>
    %cst_79 = arith.constant dense<0xFF800000> : vector<16xf32>
    %181 = vector.multi_reduction <maximumf>, %180, %cst_79 [1] : vector<16x128xf32> to vector<16xf32>
    %182 = vector.shape_cast %181 : vector<16xf32> to vector<16x1xf32>
    %183 = vector.broadcast %182 : vector<16x1xf32> to vector<16x128xf32>
    %184 = arith.subf %180, %183 : vector<16x128xf32>
    %185 = math.exp %184 : vector<16x128xf32>
    %cst_80 = arith.constant dense<0.000000e+00> : vector<16xf32>
    %186 = vector.multi_reduction <add>, %185, %cst_80 [1] : vector<16x128xf32> to vector<16xf32>
    %187 = vector.shape_cast %186 : vector<16xf32> to vector<16x1xf32>
    %188 = math.log %187 : vector<16x1xf32>
    %189 = arith.addf %182, %188 : vector<16x1xf32>
    %190 = vector.extract_strided_slice %93 {offsets = [0, 3], sizes = [16, 1], strides = [1, 1]} : vector<16x9xi32> to vector<16x1xi32>
    %191 = vector.broadcast %190 : vector<16x1xi32> to vector<16x128xi32>
    %192 = arith.cmpi eq, %94, %191 : vector<16x128xi32>
    %cst_81 = arith.constant 0.000000e+00 : f32
    %193 = vector.broadcast %cst_81 : f32 to vector<16x128xf32>
    %194 = arith.select %192, %180, %193 : vector<16x128xi1>, vector<16x128xf32>
    %cst_82 = arith.constant dense<0.000000e+00> : vector<16xf32>
    %195 = vector.multi_reduction <add>, %194, %cst_82 [1] : vector<16x128xf32> to vector<16xf32>
    %196 = vector.shape_cast %195 : vector<16xf32> to vector<16x1xf32>
    %197 = arith.subf %189, %196 : vector<16x1xf32>
    %198 = vector.shape_cast %197 : vector<16x1xf32> to vector<1x16x1xf32>
    %cst_83 = arith.constant dense<0.000000e+00> : vector<1xf32>
    %199 = vector.multi_reduction <add>, %198, %cst_83 [1, 2] : vector<1x16x1xf32> to vector<1xf32>
    %200 = vector.shape_cast %199 : vector<1xf32> to vector<1x1x1xf32>
    %201 = vector.extract %200[0, 0, 0] : f32 from vector<1x1x1xf32>
    %202 = arith.addf %175, %201 : f32
    %c0_84 = arith.constant 0 : index
    %c512 = arith.constant 512 : index
    %203 = vector.load %arg10[%c0_84, %c512] : memref<32x1152xbf16, #tpu.memory_space<vmem>>, vector<32x128xbf16>
    %cst_85 = arith.constant dense<0.000000e+00> : vector<16x128xf32>
    %204 = tpu.matmul %92, %203, %cst_85 {dimension_numbers = #tpu.dot_dimension_numbers<[1], [0], [0], [1], [0, 0, 1, 1], [], []>} : vector<16x32xbf16>, vector<32x128xbf16>, vector<16x128xf32> -> vector<16x128xf32>
    %c0_86 = arith.constant 0 : index
    %c512_87 = arith.constant 512 : index
    %205 = vector.load %arg11[%c0_86, %c512_87] : memref<1x1152xf32, #tpu.memory_space<vmem>>, vector<1x128xf32>
    %206 = vector.broadcast %205 : vector<1x128xf32> to vector<16x128xf32>
    %207 = arith.addf %204, %206 : vector<16x128xf32>
    %cst_88 = arith.constant dense<0xFF800000> : vector<16xf32>
    %208 = vector.multi_reduction <maximumf>, %207, %cst_88 [1] : vector<16x128xf32> to vector<16xf32>
    %209 = vector.shape_cast %208 : vector<16xf32> to vector<16x1xf32>
    %210 = vector.broadcast %209 : vector<16x1xf32> to vector<16x128xf32>
    %211 = arith.subf %207, %210 : vector<16x128xf32>
    %212 = math.exp %211 : vector<16x128xf32>
    %cst_89 = arith.constant dense<0.000000e+00> : vector<16xf32>
    %213 = vector.multi_reduction <add>, %212, %cst_89 [1] : vector<16x128xf32> to vector<16xf32>
    %214 = vector.shape_cast %213 : vector<16xf32> to vector<16x1xf32>
    %215 = math.log %214 : vector<16x1xf32>
    %216 = arith.addf %209, %215 : vector<16x1xf32>
    %217 = vector.extract_strided_slice %93 {offsets = [0, 4], sizes = [16, 1], strides = [1, 1]} : vector<16x9xi32> to vector<16x1xi32>
    %218 = vector.broadcast %217 : vector<16x1xi32> to vector<16x128xi32>
    %219 = arith.cmpi eq, %94, %218 : vector<16x128xi32>
    %cst_90 = arith.constant 0.000000e+00 : f32
    %220 = vector.broadcast %cst_90 : f32 to vector<16x128xf32>
    %221 = arith.select %219, %207, %220 : vector<16x128xi1>, vector<16x128xf32>
    %cst_91 = arith.constant dense<0.000000e+00> : vector<16xf32>
    %222 = vector.multi_reduction <add>, %221, %cst_91 [1] : vector<16x128xf32> to vector<16xf32>
    %223 = vector.shape_cast %222 : vector<16xf32> to vector<16x1xf32>
    %224 = arith.subf %216, %223 : vector<16x1xf32>
    %225 = vector.shape_cast %224 : vector<16x1xf32> to vector<1x16x1xf32>
    %cst_92 = arith.constant dense<0.000000e+00> : vector<1xf32>
    %226 = vector.multi_reduction <add>, %225, %cst_92 [1, 2] : vector<1x16x1xf32> to vector<1xf32>
    %227 = vector.shape_cast %226 : vector<1xf32> to vector<1x1x1xf32>
    %228 = vector.extract %227[0, 0, 0] : f32 from vector<1x1x1xf32>
    %229 = arith.addf %202, %228 : f32
    %c0_93 = arith.constant 0 : index
    %c640 = arith.constant 640 : index
    %230 = vector.load %arg10[%c0_93, %c640] : memref<32x1152xbf16, #tpu.memory_space<vmem>>, vector<32x128xbf16>
    %cst_94 = arith.constant dense<0.000000e+00> : vector<16x128xf32>
    %231 = tpu.matmul %92, %230, %cst_94 {dimension_numbers = #tpu.dot_dimension_numbers<[1], [0], [0], [1], [0, 0, 1, 1], [], []>} : vector<16x32xbf16>, vector<32x128xbf16>, vector<16x128xf32> -> vector<16x128xf32>
    %c0_95 = arith.constant 0 : index
    %c640_96 = arith.constant 640 : index
    %232 = vector.load %arg11[%c0_95, %c640_96] : memref<1x1152xf32, #tpu.memory_space<vmem>>, vector<1x128xf32>
    %233 = vector.broadcast %232 : vector<1x128xf32> to vector<16x128xf32>
    %234 = arith.addf %231, %233 : vector<16x128xf32>
    %cst_97 = arith.constant dense<0xFF800000> : vector<16xf32>
    %235 = vector.multi_reduction <maximumf>, %234, %cst_97 [1] : vector<16x128xf32> to vector<16xf32>
    %236 = vector.shape_cast %235 : vector<16xf32> to vector<16x1xf32>
    %237 = vector.broadcast %236 : vector<16x1xf32> to vector<16x128xf32>
    %238 = arith.subf %234, %237 : vector<16x128xf32>
    %239 = math.exp %238 : vector<16x128xf32>
    %cst_98 = arith.constant dense<0.000000e+00> : vector<16xf32>
    %240 = vector.multi_reduction <add>, %239, %cst_98 [1] : vector<16x128xf32> to vector<16xf32>
    %241 = vector.shape_cast %240 : vector<16xf32> to vector<16x1xf32>
    %242 = math.log %241 : vector<16x1xf32>
    %243 = arith.addf %236, %242 : vector<16x1xf32>
    %244 = vector.extract_strided_slice %93 {offsets = [0, 5], sizes = [16, 1], strides = [1, 1]} : vector<16x9xi32> to vector<16x1xi32>
    %245 = vector.broadcast %244 : vector<16x1xi32> to vector<16x128xi32>
    %246 = arith.cmpi eq, %94, %245 : vector<16x128xi32>
    %cst_99 = arith.constant 0.000000e+00 : f32
    %247 = vector.broadcast %cst_99 : f32 to vector<16x128xf32>
    %248 = arith.select %246, %234, %247 : vector<16x128xi1>, vector<16x128xf32>
    %cst_100 = arith.constant dense<0.000000e+00> : vector<16xf32>
    %249 = vector.multi_reduction <add>, %248, %cst_100 [1] : vector<16x128xf32> to vector<16xf32>
    %250 = vector.shape_cast %249 : vector<16xf32> to vector<16x1xf32>
    %251 = arith.subf %243, %250 : vector<16x1xf32>
    %252 = vector.shape_cast %251 : vector<16x1xf32> to vector<1x16x1xf32>
    %cst_101 = arith.constant dense<0.000000e+00> : vector<1xf32>
    %253 = vector.multi_reduction <add>, %252, %cst_101 [1, 2] : vector<1x16x1xf32> to vector<1xf32>
    %254 = vector.shape_cast %253 : vector<1xf32> to vector<1x1x1xf32>
    %255 = vector.extract %254[0, 0, 0] : f32 from vector<1x1x1xf32>
    %256 = arith.addf %229, %255 : f32
    %c0_102 = arith.constant 0 : index
    %c768 = arith.constant 768 : index
    %257 = vector.load %arg10[%c0_102, %c768] : memref<32x1152xbf16, #tpu.memory_space<vmem>>, vector<32x128xbf16>
    %cst_103 = arith.constant dense<0.000000e+00> : vector<16x128xf32>
    %258 = tpu.matmul %92, %257, %cst_103 {dimension_numbers = #tpu.dot_dimension_numbers<[1], [0], [0], [1], [0, 0, 1, 1], [], []>} : vector<16x32xbf16>, vector<32x128xbf16>, vector<16x128xf32> -> vector<16x128xf32>
    %c0_104 = arith.constant 0 : index
    %c768_105 = arith.constant 768 : index
    %259 = vector.load %arg11[%c0_104, %c768_105] : memref<1x1152xf32, #tpu.memory_space<vmem>>, vector<1x128xf32>
    %260 = vector.broadcast %259 : vector<1x128xf32> to vector<16x128xf32>
    %261 = arith.addf %258, %260 : vector<16x128xf32>
    %cst_106 = arith.constant dense<0xFF800000> : vector<16xf32>
    %262 = vector.multi_reduction <maximumf>, %261, %cst_106 [1] : vector<16x128xf32> to vector<16xf32>
    %263 = vector.shape_cast %262 : vector<16xf32> to vector<16x1xf32>
    %264 = vector.broadcast %263 : vector<16x1xf32> to vector<16x128xf32>
    %265 = arith.subf %261, %264 : vector<16x128xf32>
    %266 = math.exp %265 : vector<16x128xf32>
    %cst_107 = arith.constant dense<0.000000e+00> : vector<16xf32>
    %267 = vector.multi_reduction <add>, %266, %cst_107 [1] : vector<16x128xf32> to vector<16xf32>
    %268 = vector.shape_cast %267 : vector<16xf32> to vector<16x1xf32>
    %269 = math.log %268 : vector<16x1xf32>
    %270 = arith.addf %263, %269 : vector<16x1xf32>
    %271 = vector.extract_strided_slice %93 {offsets = [0, 6], sizes = [16, 1], strides = [1, 1]} : vector<16x9xi32> to vector<16x1xi32>
    %272 = vector.broadcast %271 : vector<16x1xi32> to vector<16x128xi32>
    %273 = arith.cmpi eq, %94, %272 : vector<16x128xi32>
    %cst_108 = arith.constant 0.000000e+00 : f32
    %274 = vector.broadcast %cst_108 : f32 to vector<16x128xf32>
    %275 = arith.select %273, %261, %274 : vector<16x128xi1>, vector<16x128xf32>
    %cst_109 = arith.constant dense<0.000000e+00> : vector<16xf32>
    %276 = vector.multi_reduction <add>, %275, %cst_109 [1] : vector<16x128xf32> to vector<16xf32>
    %277 = vector.shape_cast %276 : vector<16xf32> to vector<16x1xf32>
    %278 = arith.subf %270, %277 : vector<16x1xf32>
    %279 = vector.shape_cast %278 : vector<16x1xf32> to vector<1x16x1xf32>
    %cst_110 = arith.constant dense<0.000000e+00> : vector<1xf32>
    %280 = vector.multi_reduction <add>, %279, %cst_110 [1, 2] : vector<1x16x1xf32> to vector<1xf32>
    %281 = vector.shape_cast %280 : vector<1xf32> to vector<1x1x1xf32>
    %282 = vector.extract %281[0, 0, 0] : f32 from vector<1x1x1xf32>
    %283 = arith.addf %256, %282 : f32
    %c0_111 = arith.constant 0 : index
    %c896 = arith.constant 896 : index
    %284 = vector.load %arg10[%c0_111, %c896] : memref<32x1152xbf16, #tpu.memory_space<vmem>>, vector<32x128xbf16>
    %cst_112 = arith.constant dense<0.000000e+00> : vector<16x128xf32>
    %285 = tpu.matmul %92, %284, %cst_112 {dimension_numbers = #tpu.dot_dimension_numbers<[1], [0], [0], [1], [0, 0, 1, 1], [], []>} : vector<16x32xbf16>, vector<32x128xbf16>, vector<16x128xf32> -> vector<16x128xf32>
    %c0_113 = arith.constant 0 : index
    %c896_114 = arith.constant 896 : index
    %286 = vector.load %arg11[%c0_113, %c896_114] : memref<1x1152xf32, #tpu.memory_space<vmem>>, vector<1x128xf32>
    %287 = vector.broadcast %286 : vector<1x128xf32> to vector<16x128xf32>
    %288 = arith.addf %285, %287 : vector<16x128xf32>
    %cst_115 = arith.constant dense<0xFF800000> : vector<16xf32>
    %289 = vector.multi_reduction <maximumf>, %288, %cst_115 [1] : vector<16x128xf32> to vector<16xf32>
    %290 = vector.shape_cast %289 : vector<16xf32> to vector<16x1xf32>
    %291 = vector.broadcast %290 : vector<16x1xf32> to vector<16x128xf32>
    %292 = arith.subf %288, %291 : vector<16x128xf32>
    %293 = math.exp %292 : vector<16x128xf32>
    %cst_116 = arith.constant dense<0.000000e+00> : vector<16xf32>
    %294 = vector.multi_reduction <add>, %293, %cst_116 [1] : vector<16x128xf32> to vector<16xf32>
    %295 = vector.shape_cast %294 : vector<16xf32> to vector<16x1xf32>
    %296 = math.log %295 : vector<16x1xf32>
    %297 = arith.addf %290, %296 : vector<16x1xf32>
    %298 = vector.extract_strided_slice %93 {offsets = [0, 7], sizes = [16, 1], strides = [1, 1]} : vector<16x9xi32> to vector<16x1xi32>
    %299 = vector.broadcast %298 : vector<16x1xi32> to vector<16x128xi32>
    %300 = arith.cmpi eq, %94, %299 : vector<16x128xi32>
    %cst_117 = arith.constant 0.000000e+00 : f32
    %301 = vector.broadcast %cst_117 : f32 to vector<16x128xf32>
    %302 = arith.select %300, %288, %301 : vector<16x128xi1>, vector<16x128xf32>
    %cst_118 = arith.constant dense<0.000000e+00> : vector<16xf32>
    %303 = vector.multi_reduction <add>, %302, %cst_118 [1] : vector<16x128xf32> to vector<16xf32>
    %304 = vector.shape_cast %303 : vector<16xf32> to vector<16x1xf32>
    %305 = arith.subf %297, %304 : vector<16x1xf32>
    %306 = vector.shape_cast %305 : vector<16x1xf32> to vector<1x16x1xf32>
    %cst_119 = arith.constant dense<0.000000e+00> : vector<1xf32>
    %307 = vector.multi_reduction <add>, %306, %cst_119 [1, 2] : vector<1x16x1xf32> to vector<1xf32>
    %308 = vector.shape_cast %307 : vector<1xf32> to vector<1x1x1xf32>
    %309 = vector.extract %308[0, 0, 0] : f32 from vector<1x1x1xf32>
    %310 = arith.addf %283, %309 : f32
    %c0_120 = arith.constant 0 : index
    %c1024 = arith.constant 1024 : index
    %311 = vector.load %arg10[%c0_120, %c1024] : memref<32x1152xbf16, #tpu.memory_space<vmem>>, vector<32x128xbf16>
    %cst_121 = arith.constant dense<0.000000e+00> : vector<16x128xf32>
    %312 = tpu.matmul %92, %311, %cst_121 {dimension_numbers = #tpu.dot_dimension_numbers<[1], [0], [0], [1], [0, 0, 1, 1], [], []>} : vector<16x32xbf16>, vector<32x128xbf16>, vector<16x128xf32> -> vector<16x128xf32>
    %c0_122 = arith.constant 0 : index
    %c1024_123 = arith.constant 1024 : index
    %313 = vector.load %arg11[%c0_122, %c1024_123] : memref<1x1152xf32, #tpu.memory_space<vmem>>, vector<1x128xf32>
    %314 = vector.broadcast %313 : vector<1x128xf32> to vector<16x128xf32>
    %315 = arith.addf %312, %314 : vector<16x128xf32>
    %cst_124 = arith.constant dense<0xFF800000> : vector<16xf32>
    %316 = vector.multi_reduction <maximumf>, %315, %cst_124 [1] : vector<16x128xf32> to vector<16xf32>
    %317 = vector.shape_cast %316 : vector<16xf32> to vector<16x1xf32>
    %318 = vector.broadcast %317 : vector<16x1xf32> to vector<16x128xf32>
    %319 = arith.subf %315, %318 : vector<16x128xf32>
    %320 = math.exp %319 : vector<16x128xf32>
    %cst_125 = arith.constant dense<0.000000e+00> : vector<16xf32>
    %321 = vector.multi_reduction <add>, %320, %cst_125 [1] : vector<16x128xf32> to vector<16xf32>
    %322 = vector.shape_cast %321 : vector<16xf32> to vector<16x1xf32>
    %323 = math.log %322 : vector<16x1xf32>
    %324 = arith.addf %317, %323 : vector<16x1xf32>
    %325 = vector.extract_strided_slice %93 {offsets = [0, 8], sizes = [16, 1], strides = [1, 1]} : vector<16x9xi32> to vector<16x1xi32>
    %326 = vector.broadcast %325 : vector<16x1xi32> to vector<16x128xi32>
    %327 = arith.cmpi eq, %94, %326 : vector<16x128xi32>
    %cst_126 = arith.constant 0.000000e+00 : f32
    %328 = vector.broadcast %cst_126 : f32 to vector<16x128xf32>
    %329 = arith.select %327, %315, %328 : vector<16x128xi1>, vector<16x128xf32>
    %cst_127 = arith.constant dense<0.000000e+00> : vector<16xf32>
    %330 = vector.multi_reduction <add>, %329, %cst_127 [1] : vector<16x128xf32> to vector<16xf32>
    %331 = vector.shape_cast %330 : vector<16xf32> to vector<16x1xf32>
    %332 = arith.subf %324, %331 : vector<16x1xf32>
    %333 = vector.shape_cast %332 : vector<16x1xf32> to vector<1x16x1xf32>
    %cst_128 = arith.constant dense<0.000000e+00> : vector<1xf32>
    %334 = vector.multi_reduction <add>, %333, %cst_128 [1, 2] : vector<1x16x1xf32> to vector<1xf32>
    %335 = vector.shape_cast %334 : vector<1xf32> to vector<1x1x1xf32>
    %336 = vector.extract %335[0, 0, 0] : f32 from vector<1x1x1xf32>
    %337 = arith.addf %310, %336 : f32
    %338 = tpu.iota {dimensions = array<i32: 2>} : vector<1x1x128xi32>
    %c0_i32 = arith.constant 0 : i32
    %339 = vector.broadcast %c0_i32 : i32 to vector<1x1x128xi32>
    %340 = arith.cmpi eq, %338, %339 : vector<1x1x128xi32>
    %cst_129 = arith.constant 0.000000e+00 : f32
    %341 = vector.broadcast %337 : f32 to vector<1x1x128xf32>
    %342 = vector.broadcast %cst_129 : f32 to vector<1x1x128xf32>
    %343 = arith.select %340, %341, %342 : vector<1x1x128xi1>, vector<1x1x128xf32>
    %c1_i32 = arith.constant 1 : i32
    %344 = vector.broadcast %c1_i32 : i32 to vector<1x1x128xi32>
    %345 = arith.cmpi eq, %338, %344 : vector<1x1x128xi32>
    %346 = vector.broadcast %52 : f32 to vector<1x1x128xf32>
    %347 = arith.select %345, %346, %343 : vector<1x1x128xi1>, vector<1x1x128xf32>
    %c2_i32 = arith.constant 2 : i32
    %348 = vector.broadcast %c2_i32 : i32 to vector<1x1x128xi32>
    %349 = arith.cmpi eq, %338, %348 : vector<1x1x128xi32>
    %350 = vector.broadcast %90 : f32 to vector<1x1x128xf32>
    %351 = arith.select %349, %350, %347 : vector<1x1x128xi1>, vector<1x1x128xf32>
    %c0_130 = arith.constant 0 : index
    %c0_131 = arith.constant 0 : index
    %c0_132 = arith.constant 0 : index
    %352 = vector.load %arg12[%c0_130, %c0_131, %c0_132] : memref<1x1x128xf32, #tpu.memory_space<vmem>>, vector<1x1x128xf32>
    tpu.vector_store %arg12[%c0_130, %c0_131, %c0_132], %351 {strides = array<i32>} : memref<1x1x128xf32, #tpu.memory_space<vmem>>, vector<1x1x128xf32>,
    return
  }
  func.func @transform_0(%arg0: i32) -> (i32, i32) {
    %c0_i32 = arith.constant 0 : i32
    %c0_i32_0 = arith.constant 0 : i32
    return %arg0, %c0_i32 : i32, i32
  }
  func.func @transform_1(%arg0: i32) -> (i32, i32) {
    %c0_i32 = arith.constant 0 : i32
    %c0_i32_0 = arith.constant 0 : i32
    return %arg0, %c0_i32 : i32, i32
  }
  func.func @transform_2(%arg0: i32) -> (i32, i32) {
    %c0_i32 = arith.constant 0 : i32
    %c0_i32_0 = arith.constant 0 : i32
    %c0_i32_1 = arith.constant 0 : i32
    return %c0_i32, %c0_i32_0 : i32, i32
  }
  func.func @transform_3(%arg0: i32) -> (i32, i32) {
    %c0_i32 = arith.constant 0 : i32
    %c0_i32_0 = arith.constant 0 : i32
    %c0_i32_1 = arith.constant 0 : i32
    return %c0_i32, %c0_i32_0 : i32, i32
  }
  func.func @transform_4(%arg0: i32) -> (i32, i32) {
    %c0_i32 = arith.constant 0 : i32
    %c0_i32_0 = arith.constant 0 : i32
    %c0_i32_1 = arith.constant 0 : i32
    return %c0_i32, %c0_i32_0 : i32, i32
  }
  func.func @transform_5(%arg0: i32) -> (i32, i32) {
    %c0_i32 = arith.constant 0 : i32
    %c0_i32_0 = arith.constant 0 : i32
    %c0_i32_1 = arith.constant 0 : i32
    return %c0_i32, %c0_i32_0 : i32, i32
  }
  func.func @transform_6(%arg0: i32) -> (i32, i32, i32) {
    %c0_i32 = arith.constant 0 : i32
    %c0_i32_0 = arith.constant 0 : i32
    %c0_i32_1 = arith.constant 0 : i32
    %c0_i32_2 = arith.constant 0 : i32
    return %c0_i32, %c0_i32_0, %c0_i32_1 : i32, i32, i32
  }
  func.func @transform_7(%arg0: i32) -> (i32, i32, i32) {
    %c0_i32 = arith.constant 0 : i32
    %c0_i32_0 = arith.constant 0 : i32
    %c0_i32_1 = arith.constant 0 : i32
    %c0_i32_2 = arith.constant 0 : i32
    return %c0_i32, %c0_i32_0, %c0_i32_1 : i32, i32, i32
  }
  func.func @transform_8(%arg0: i32) -> (i32, i32, i32) {
    %c0_i32 = arith.constant 0 : i32
    %c0_i32_0 = arith.constant 0 : i32
    %c0_i32_1 = arith.constant 0 : i32
    %c0_i32_2 = arith.constant 0 : i32
    return %c0_i32, %c0_i32_0, %c0_i32_1 : i32, i32, i32
  }
  func.func @transform_9(%arg0: i32) -> (i32, i32) {
    %c0_i32 = arith.constant 0 : i32
    %c0_i32_0 = arith.constant 0 : i32
    %c0_i32_1 = arith.constant 0 : i32
    return %c0_i32, %c0_i32_0 : i32, i32
  }
  func.func @transform_10(%arg0: i32) -> (i32, i32) {
    %c0_i32 = arith.constant 0 : i32
    %c0_i32_0 = arith.constant 0 : i32
    %c0_i32_1 = arith.constant 0 : i32
    return %c0_i32, %c0_i32_0 : i32, i32
  }
  func.func @transform_11(%arg0: i32) -> (i32, i32, i32) {
    %c0_i32 = arith.constant 0 : i32
    %c0_i32_0 = arith.constant 0 : i32
    %c0_i32_1 = arith.constant 0 : i32
    return %arg0, %c0_i32, %c0_i32_0 : i32, i32, i32
  }
}

</mosaic_0001>

<bundles_post_ra>
// kernel: trainer_forward_step.1
= control target key start
LH: loop header
LB: loop body
LE: loop exit
PB: predicated region body
PF: predicated region fallthrough
CT: control target
= control target key end

     0   :  { %vm60_vm0 = vcmask 1043456   ;;  %vm61_vm1 = vcmask 1044480   ;;  %v2109_v0 = vmov 0.0   ;;  %v2110_v2 = vmov 65535   ;;  %s2759_s2 = inlined_call_operand.vmem [shape: bf16[9,64], index: 2, kind: input, shape index: {}]   ;;  %s2760_s0 = inlined_call_operand.vmem [shape: f32[16,9], index: 0, kind: input, shape index: {}]   ;;  %s2761_s4 = inlined_call_operand.vmem [shape: bf16[64,32], index: 4, kind: input, shape index: {}]   ;;  %s2762_s7 = inlined_call_operand.vmem [shape: bf16[2,32,64], index: 7, kind: input, shape index: {}]   ;;  %s2763_s3 = inlined_call_operand.vmem [shape: f32[1,64], index: 3, kind: input, shape index: {}]   ;;  %s2764_s5 = inlined_call_operand.vmem [shape: f32[1,32], index: 5, kind: input, shape index: {}]   ;;  %s2765_s8 = inlined_call_operand.vmem [shape: f32[2,1,64], index: 8, kind: input, shape index: {}]   ;;  %s2766_s6 = inlined_call_operand.vmem [shape: bf16[2,64,32], index: 6, kind: input, shape index: {}]   ;;  %s2767_s9 = inlined_call_operand.vmem [shape: bf16[32,1152], index: 9, kind: input, shape index: {}]   ;;  %s2768_s1 = inlined_call_operand.vmem [shape: s32[16,9], index: 1, kind: input, shape index: {}]   ;;  %s2769_s10 = inlined_call_operand.vmem [shape: f32[1,1152], index: 10, kind: input, shape index: {}]   ;;  %s2770_s11 = inlined_call_operand.vmem [shape: f32[1,1,128], index: 11, kind: output, shape index: {}]  }
   0x1   :  { %1819 = vmatprep.subr.bf16.mxu0 %v2109_v0  ;;  %v2002_v1 = vld [vmem:[%s2759_s2] sm:$0x1f]   ;;  %1825 = vmatprep.subr.bf16.mxu1 %v2109_v0  ;;  %v62_v3 = vsel %vm60_vm0, 4294967295, %v2110_v2  ;;  %v40_v5 = vld [vmem:[%s2760_s0 + $0x8] sm:$0xff]  ;;  %vm2111_vm2 = vmmov 0   ;;  %vm56_vm3 = vcmask 72704   ;;  %v195_v44 = vlaneseq }
   0x2   :  { %v39_v4 = vld [vmem:[%s2760_s0] sm:$0xff]  ;;  %v63_v7 = vsel %vm61_vm1, %v62_v3, 0  ;;  %1821 = vmatprep.mubr.msk.bf16.mxu0 %vm2111_vm2, %v2109_v0  ;;  %1833 = vmatprep.mubr.msk.bf16.mxu1 %vm2111_vm2, %v2109_v0  ;;  %v2004_v9 = vld [vmem:[%s2761_s4 + $0x8] sm:$0xff]   ;;  %v2005_v11 = vld [vmem:[%s2761_s4 + $0x10] sm:$0xff]   ;;  %vm150_vm4 = vcmask 523264   ;;  %vm214_vm5 = vcmask 261120  }
   0x3   :  { %v2003_v6 = vld [vmem:[%s2761_s4] sm:$0xff]   ;;  %v65_v8 = vand.u32 %v2002_v1, %v63_v7  ;;  %v41_v10 = vpack.c.bf16 %v40_v5, %v39_v4  ;;  %v2006_v12 = vld [vmem:[%s2761_s4 + $0x18] sm:$0xff]   ;;  %v2008_v24 = vld [vmem:[%s2762_s7 + $0x8] sm:$0xff]   ;;  %v2246_v45 = vand.u32 127, %v195_v44  ;;  %vm407_vm15 = vcmask 7168  }
   0x4   :  { %1826 = vmatpush3.bf16.msra.mxu1 %v2003_v6  ;;  %v2007_v13 = vld [vmem:[%s2762_s7] sm:$0xff]   ;;  %v2010_v2 = vld [vmem:[%s2766_s6 + $0x8] sm:$0xff]   ;;  %v2011_v3 = vld [vmem:[%s2766_s6 + $0x10] sm:$0xff]  }
   0x5   :  { %1827 = vmatprep.subr.bf16.mxu1 %v2109_v0  ;;  %1820 = vmatpush3.bf16.msra.mxu0 %v65_v8  ;;  %v1689_v14 = vld [vmem:[%s2763_s3] ss:$0 sm:$0xff]  ;;  %v2012_v4 = vld [vmem:[%s2766_s6 + $0x18] sm:$0xff]   ;;  %v2013_v5 = vld [vmem:[%s2762_s7 + $0x10] sm:$0xff]  }
   0x6   :  { %1837 = vmatprep.subr.bf16.mxu0 %v2109_v0  ;;  %v1692_v25 = vld [vmem:[%s2764_s5] ss:$0 sm:$0xff] }
   0x7   :  { %v1701_v34 = vld [vmem:[%s2765_s8] ss:$0 sm:$0xff] }
   0x8   :  { %1828 = vmatpush3.bf16.msra.mxu1 %v2004_v9  ;;  %1822 = vmatmul.mubr.msk.bf16.vlgmr.msra.gmra.mrb[0].mxu0 %vm56_vm3, %v41_v10  ;;  %v2009_v56 = vld [vmem:[%s2766_s6] sm:$0xff]  }
   0x9   :  { %1829 = vmatprep.subr.bf16.mxu1 %v2109_v0  ;;  %1841 = vmatprep.mubr.msk.bf16.mxu0 %vm2111_vm2, %v2109_v0 }
   0xa   :  { %1838 = vmatpush3.bf16.msra.mxu0 %v2007_v13 }
   0xb   :  { %1839 = vmatprep.subr.bf16.mxu0 %v2109_v0 }
   0xc   :  { %1830 = vmatpush3.bf16.msra.mxu1 %v2005_v11 }
   0xd   :  { %1831 = vmatprep.subr.bf16.mxu1 %v2109_v0 }
   0xe   :  { %1840 = vmatpush3.bf16.msra.mxu0 %v2008_v24 }
   0xf   :  { %1845 = vmatprep.subr.bf16.mxu0 %v2109_v0 }
  0x10   :  { %1832 = vmatpush3.bf16.msra.mxu1 %v2006_v12 }
  0x11   :  { %1857 = vmatprep.subr.bf16.mxu1 %v2109_v0 }
  0xdb   :  { %v101_v15 = vpop.f32.mrb[0].mxu0 }
  0xdc   :  { %v102_v16 = vadd.f32 %v1689_v14, %v101_v15  ;;  %v1823_v17 = vpop.f32.mrb[1].mxu0 }
  0xdd   :  { %v104_v18 = vpop.f32.mrb[2].mxu0 }
  0xde   :  { %v105_v19 = vadd.f32 %v1689_v14, %v104_v18  ;;  %v1824_v20 = vpop.f32.mrb[3].mxu0  ;;  %v108_v21 = vmax.f32 %v102_v16, 0.0 }
  0xe0   :  { %v109_v22 = vmax.f32 %v105_v19, 0.0  ;;  %v2014_v19 = vld [vmem:[%s2762_s7 + $0x18] sm:$0xff]  }
  0xe2   :  { %v110_v23 = vpack.c.bf16 %v109_v22, %v108_v21 }
  0xe4   :  { %1834 = vmatmul.mubr.msk.bf16.vlgmr.msra.gmra.mrb[0].mxu1 %vm150_vm4, %v110_v23 }
  0xe5   :  { %1861 = vmatprep.mubr.msk.bf16.mxu1 %vm2111_vm2, %v2109_v0  ;;  %1858 = vmatpush3.bf16.msra.mxu1 %v2013_v5 }
  0xe6   :  { %1859 = vmatprep.subr.bf16.mxu1 %v2109_v0 }
  0xe9   :  { %1860 = vmatpush3.bf16.msra.mxu1 %v2014_v19 }
  0xea   :  { %1865 = vmatprep.subr.bf16.mxu1 %v2109_v0 }
 0x1b7   :  { %v188_v26 = vpop.f32.mrb[0].mxu1 }
 0x1b8   :  { %v1835_v27 = vpop.f32.mrb[1].mxu1  ;;  %v2232_v29 = vadd.f32 %v1692_v25, %v188_v26 }
 0x1b9   :  { %v191_v28 = vpop.f32.mrb[2].mxu1 }
 0x1ba   :  { %v2234_v30 = vadd.f32 %v1692_v25, %v191_v28  ;;  %v1836_v31 = vpop.f32.mrb[3].mxu1 }
 0x1bc   :  { %v197_v32 = vpack.c.bf16 %v2234_v30, %v2232_v29 }
 0x1be   :  { %1842 = vmatmul.mubr.msk.bf16.vlgmr.msra.gmra.mrb[4].mxu0 %vm214_vm5, %v197_v32 }
 0x1bf   :  { %1853 = vmatprep.mubr.msk.bf16.mxu0 %vm2111_vm2, %v2109_v0  ;;  %1846 = vmatpush3.bf16.msra.mxu0 %v2009_v56 }
 0x1c0   :  { %1847 = vmatprep.subr.bf16.mxu0 %v2109_v0 }
 0x1c3   :  { %1848 = vmatpush3.bf16.msra.mxu0 %v2010_v2  ;;  %v393_v2 = vmul.f32 %v2232_v29, %v2232_v29 }
 0x1c4   :  { %1849 = vmatprep.subr.bf16.mxu0 %v2109_v0 }
 0x1c7   :  { %1850 = vmatpush3.bf16.msra.mxu0 %v2011_v3 }
 0x1c8   :  { %1851 = vmatprep.subr.bf16.mxu0 %v2109_v0 }
 0x1cb   :  { %1852 = vmatpush3.bf16.msra.mxu0 %v2012_v4 }
 0x1cc   :  { %1877 = vmatprep.subr.bf16.mxu0 %v2109_v0 }
 0x291   :  { %v252_v33 = vpop.f32.mrb[4].mxu0 }
 0x292   :  { %v260_v35 = vmul.f32 2.0, %v252_v33  ;;  %v1843_v36 = vpop.f32.mrb[5].mxu0 }
 0x293   :  { %v255_v37 = vpop.f32.mrb[6].mxu0 }
 0x294   :  { %v261_v38 = vmul.f32 2.0, %v255_v37  ;;  %v1844_v39 = vpop.f32.mrb[7].mxu0  ;;  %v268_v40 = vsub.f32 %v1701_v34, %v260_v35  ;;  %v1717_v35 = vld [vmem:[%s2765_s8 + $0x1] ss:$0 sm:$0xff] }
 0x296   :  { %v270_v41 = vsel %vm150_vm4, %v268_v40, inf  ;;  %v269_v42 = vsub.f32 %v1701_v34, %v261_v38 }
 0x297   :  { %271 = vmin.xlane.f32.xlu0 %v270_v41 }
 0x298   :  { %v273_v43 = vsel %vm150_vm4, %v269_v42, inf }
 0x29b   :  { %274 = vmin.xlane.f32.xlu0 %v273_v43 }
 0x324   :  { %v2248_v46 = vpop.xlane.xlu0 %271 }
 0x325   :  { %vm276_vm6 = vcmp.le.f32.partialorder %v268_v40, %v2248_v46 }
 0x326   :  { %v278_v47 = vsel %vm276_vm6, %v2246_v45, 64 }
 0x327   :  { %v280_v48 = vsel %vm150_vm4, %v278_v47, 2147483647 }
 0x328   :  { %v2253_v49 = vpop.xlane.xlu0 %274  ;;  %v282_v50 = vshra.s32 %v280_v48, 16  ;;  %v281_v57 = vand.u32 65535, %v280_v48 }
 0x329   :  { %vm277_vm7 = vcmp.le.f32.partialorder %v269_v42, %v2253_v49 }
 0x32a   :  { %v279_v51 = vsel %vm277_vm7, %v2246_v45, 64  ;;  %v284_v52 = vcvt.s32.f32 %v282_v50  ;;  %v283_v59 = vcvt.s32.f32 %v281_v57 }
 0x32b   :  { %v295_v53 = vsel %vm150_vm4, %v279_v51, 2147483647 }
 0x32c   :  { %285 = vmin.xlane.f32.xlu1 %v284_v52  ;;  %v297_v54 = vshra.s32 %v295_v53, 16  ;;  %v296_v60 = vand.u32 65535, %v295_v53 }
 0x32e   :  { %v299_v55 = vcvt.s32.f32 %v297_v54  ;;  %v298_v63 = vcvt.s32.f32 %v296_v60 }
 0x330   :  { %300 = vmin.xlane.f32.xlu1 %v299_v55 }
 0x3b9   :  { %v286_v58 = vpop.xlane.xlu1 %285 }
 0x3ba   :  { %vm287_vm8 = vcmp.eq.f32.partialorder %v284_v52, %v286_v58  ;;  %v292_v6 = vcvt.f32.s32 %v286_v58  ;;  %v2015_v58 = vld [vmem:[%s2766_s6 + $0x20] sm:$0xff]  }
 0x3bb   :  { %v288_v61 = vsel %vm287_vm8, %v283_v59, inf  ;;  %v2016_v59 = vld [vmem:[%s2766_s6 + $0x28] sm:$0xff]  }
 0x3bc   :  { %289 = vmin.xlane.f32.xlu0 %v288_v61  ;;  %v293_v8 = vshll.u32 %v292_v6, 16 }
 0x3bd   :  { %v301_v62 = vpop.xlane.xlu1 %300 }
 0x3be   :  { %vm302_vm9 = vcmp.eq.f32.partialorder %v299_v55, %v301_v62  ;;  %v307_v9 = vcvt.f32.s32 %v301_v62  ;;  %v394_v62 = vmul.f32 %v2234_v30, %v2234_v30 }
 0x3bf   :  { %v303_v1 = vsel %vm302_vm9, %v298_v63, inf }
 0x3c0   :  { %304 = vmin.xlane.f32.xlu1 %v303_v1  ;;  %v308_v13 = vshll.u32 %v307_v9, 16  ;;  %v396_v6 = vsel %vm214_vm5, %v394_v62, 0.0 }
 0x449   :  { %v290_v7 = vpop.xlane.xlu0 %289 }
 0x44a   :  { %v291_v10 = vcvt.f32.s32 %v290_v7  ;;  %v409_v7 = vsel %vm407_vm15, %v2253_v49, 0.0  ;;  %v2017_v49 = vld [vmem:[%s2766_s6 + $0x30] sm:$0xff]  }
 0x44c   :  { %v294_v11 = vadd.s32 %v293_v8, %v291_v10 }
 0x44d   :  { %v305_v12 = vpop.xlane.xlu1 %304 }
 0x44e   :  { %v306_v14 = vcvt.f32.s32 %v305_v12  ;;  %vm310_vm10 = vcmp.eq.s32.totalorder %v2246_v45, %v294_v11 }
 0x44f   :  { %v1702_v16 = vsel %vm310_vm10, 1.0, %v2109_v0 }
 0x450   :  { %v309_v15 = vadd.s32 %v308_v13, %v306_v14 }
 0x452   :  { %vm311_vm11 = vcmp.eq.s32.totalorder %v2246_v45, %v309_v15 }
 0x453   :  { %v1703_v17 = vsel %vm311_vm11, 1.0, %v2109_v0 }
 0x454   :  { %v316_v18 = vpack.c.bf16 %v1703_v17, %v1702_v16 }
 0x456   :  { %1854 = vmatmul.mubr.msk.bf16.vlgmr.msra.gmra.mrb[8].mxu0 %vm150_vm4, %v316_v18 }
 0x457   :  { %1881 = vmatprep.mubr.msk.bf16.mxu0 %vm2111_vm2, %v2109_v0 }
 0x529   :  { %v2289_v20 = vpop.f32.mrb[8].mxu0 }
 0x52a   :  { %v423_v21 = vsub.f32 %v2232_v29, %v2289_v20  ;;  %v1855_v22 = vpop.f32.mrb[9].mxu0  ;;  %v408_v29 = vsel %vm407_vm15, %v2248_v46, 0.0  ;;  %v2018_v46 = vld [vmem:[%s2766_s6 + $0x38] sm:$0xff]  }
 0x52b   :  { %v2293_v23 = vpop.f32.mrb[10].mxu0  ;;  %v410_v10 = vadd.f32 %v409_v7, %v408_v29  ;;  %v2114_v7 = vmov 2   ;;  %v2118_v29 = vmov 5  }
 0x52c   :  { %v623_v24 = vmul.f32 %v423_v21, %v423_v21  ;;  %v424_v25 = vsub.f32 %v2234_v30, %v2293_v23  ;;  %v1856_v26 = vpop.f32.mrb[11].mxu0  ;;  %v395_v30 = vsel %vm214_vm5, %v393_v2, 0.0  ;;  %v2022_v2 = vld [vmem:[%s2767_s9 + $0x48] ss:$36 sps:$4 sm:$0xff]  }
 0x52d   :  { %v397_v9 = vadd.f32 %v396_v6, %v395_v30  ;;  %v2113_v6 = vmov 1   ;;  %v2116_v30 = vmov 4  }
 0x52e   :  { %v425_v27 = vpack.c.bf16 %v424_v25, %v423_v21  ;;  %v624_v28 = vmul.f32 %v424_v25, %v424_v25  ;;  %v625_v31 = vsel %vm214_vm5, %v623_v24, 0.0 }
 0x530   :  { %1862 = vmatmul.mubr.msk.bf16.vlgmr.msra.gmra.mrb[4].mxu1 %vm214_vm5, %v425_v27  ;;  %v626_v32 = vsel %vm214_vm5, %v624_v28, 0.0 }
 0x531   :  { %v627_v33 = vadd.f32 %v626_v32, %v625_v31  ;;  %1873 = vmatprep.mubr.msk.bf16.mxu1 %vm2111_vm2, %v2109_v0  ;;  %1866 = vmatpush3.bf16.msra.mxu1 %v2015_v58 }
 0x532   :  { %1867 = vmatprep.subr.bf16.mxu1 %v2109_v0 }
 0x535   :  { %1868 = vmatpush3.bf16.msra.mxu1 %v2016_v59 }
 0x536   :  { %1869 = vmatprep.subr.bf16.mxu1 %v2109_v0 }
 0x539   :  { %1870 = vmatpush3.bf16.msra.mxu1 %v2017_v49 }
 0x53a   :  { %1871 = vmatprep.subr.bf16.mxu1 %v2109_v0 }
 0x53d   :  { %1872 = vmatpush3.bf16.msra.mxu1 %v2018_v46 }
 0x53e   :  { %1893 = vmatprep.subr.bf16.mxu1 %v2109_v0 }
 0x603   :  { %v480_v34 = vpop.f32.mrb[4].mxu1 }
 0x604   :  { %v489_v36 = vmul.f32 2.0, %v480_v34  ;;  %v1863_v37 = vpop.f32.mrb[5].mxu1 }
 0x605   :  { %v483_v38 = vpop.f32.mrb[6].mxu1 }
 0x606   :  { %v490_v39 = vmul.f32 2.0, %v483_v38  ;;  %v1864_v40 = vpop.f32.mrb[7].mxu1  ;;  %v497_v41 = vsub.f32 %v1717_v35, %v489_v36  ;;  %v2019_v36 = vld [vmem:[%s2767_s9 + $0x8] ss:$36 sps:$4 sm:$0xff]  }
 0x608   :  { %v499_v42 = vsel %vm150_vm4, %v497_v41, inf  ;;  %v498_v43 = vsub.f32 %v1717_v35, %v490_v39 }
 0x609   :  { %500 = vmin.xlane.f32.xlu0 %v499_v42 }
 0x60a   :  { %v502_v44 = vsel %vm150_vm4, %v498_v43, inf }
 0x60b   :  { %503 = vmin.xlane.f32.xlu1 %v502_v44 }
 0x696   :  { %v501_v47 = vpop.xlane.xlu0 %500 }
 0x697   :  { %vm505_vm12 = vcmp.le.f32.partialorder %v497_v41, %v501_v47  ;;  %v637_v12 = vsel %vm407_vm15, %v501_v47, 0.0 }
 0x698   :  { %v507_v48 = vsel %vm505_vm12, %v2246_v45, 64  ;;  %v504_v50 = vpop.xlane.xlu1 %503 }
 0x699   :  { %vm506_vm13 = vcmp.le.f32.partialorder %v498_v43, %v504_v50  ;;  %v509_v51 = vsel %vm150_vm4, %v507_v48, 2147483647  ;;  %v638_v11 = vsel %vm407_vm15, %v504_v50, 0.0 }
 0x69a   :  { %v511_v52 = vshra.s32 %v509_v51, 16  ;;  %v508_v53 = vsel %vm506_vm13, %v2246_v45, 64  ;;  %v510_v60 = vand.u32 65535, %v509_v51  ;;  %v639_v13 = vadd.f32 %v638_v11, %v637_v12 }
 0x69b   :  { %v524_v54 = vsel %vm150_vm4, %v508_v53, 2147483647 }
 0x69c   :  { %v513_v55 = vcvt.s32.f32 %v511_v52  ;;  %v526_v56 = vshra.s32 %v524_v54, 16  ;;  %v525_v61 = vand.u32 65535, %v524_v54  ;;  %v512_v1 = vcvt.s32.f32 %v510_v60 }
 0x69e   :  { %514 = vmin.xlane.f32.xlu0 %v513_v55  ;;  %v528_v57 = vcvt.s32.f32 %v526_v56  ;;  %v527_v5 = vcvt.s32.f32 %v525_v61 }
 0x6a0   :  { %529 = vmin.xlane.f32.xlu1 %v528_v57 }
 0x72b   :  { %v515_v63 = vpop.xlane.xlu0 %514 }
 0x72c   :  { %vm516_vm14 = vcmp.eq.f32.partialorder %v513_v55, %v515_v63  ;;  %v521_v14 = vcvt.f32.s32 %v515_v63  ;;  %v2020_v63 = vld [vmem:[%s2767_s9] ss:$36 sps:$4 sm:$0xff]  }
 0x72d   :  { %v530_v3 = vpop.xlane.xlu1 %529  ;;  %v517_v4 = vsel %vm516_vm14, %v512_v1, inf  ;;  %1878 = vmatpush3.bf16.msra.mxu0 %v2020_v63  ;;  %v2021_v1 = vld [vmem:[%s2767_s9 + $0x50] ss:$36 sps:$4 sm:$0xff]  }
 0x72e   :  { %518 = vmin.xlane.f32.xlu0 %v517_v4  ;;  %vm531_vm0 = vcmp.eq.f32.partialorder %v528_v57, %v530_v3  ;;  %v536_v15 = vcvt.f32.s32 %v530_v3  ;;  %v522_v17 = vshll.u32 %v521_v14, 16  ;;  %1879 = vmatprep.subr.bf16.mxu0 %v2109_v0  ;;  %v2112_v3 = vmov 0   ;;  %v2365_v4 = vld [vmem:[%s2768_s1 + $0x8] sm:$0xff] }
 0x72f   :  { %v532_v8 = vsel %vm531_vm0, %v527_v5, inf  ;;  %1988 = vset.pattern.permute.xlu1 %v2112_v3  ;;  %v2370_v5 = vld [vmem:[%s2768_s1] sm:$0xff]  ;;  %1987 = vset.pattern.permute.xlu0 %v2112_v3 }
 0x730   :  { %533 = vmin.xlane.f32.xlu1 %v532_v8  ;;  %v537_v21 = vshll.u32 %v536_v15, 16  ;;  %v2115_v8 = vmov 3   ;;  %v2023_v15 = vld [vmem:[%s2767_s9 + $0x4] ss:$36 sps:$4 sm:$0xff]  }
 0x731   :  { %1880 = vmatpush3.bf16.msra.mxu0 %v2022_v2 }
 0x732   :  { %398 = vadd.xlane.f32.xlu0 %v397_v9  ;;  %1885 = vmatprep.subr.bf16.mxu0 %v2109_v0  ;;  %v2117_v9 = vmov 7  }
 0x734   :  { %411 = vadd.xlane.f32.xlu1 %v410_v10  ;;  %v2119_v10 = vmov 6  }
 0x736   :  { %628 = vadd.xlane.f32.xlu0 %v627_v33 }
 0x738   :  { %640 = vadd.xlane.f32.xlu1 %v639_v13 }
 0x749   :  { %746 = vperm.xlu1 %1988, %v2365_v4  }
 0x74c   :  { %743 = vperm.xlu0 %1987, %v2370_v5  }
 0x74d   :  { %1989 = vset.pattern.permute.xlu1 %v2113_v6 }
 0x74e   :  { %856 = vperm.xlu1 %1989, %v2370_v5  }
 0x750   :  { %1990 = vset.pattern.permute.xlu0 %v2113_v6 }
 0x751   :  { %859 = vperm.xlu0 %1990, %v2365_v4  }
 0x752   :  { %1991 = vset.pattern.permute.xlu1 %v2114_v7 }
 0x753   :  { %969 = vperm.xlu1 %1991, %v2370_v5  }
 0x755   :  { %1992 = vset.pattern.permute.xlu0 %v2114_v7 }
 0x756   :  { %972 = vperm.xlu0 %1992, %v2365_v4  }
 0x757   :  { %1994 = vset.pattern.permute.xlu1 %v2115_v8 }
 0x758   :  { %1085 = vperm.xlu1 %1994, %v2365_v4  }
 0x75a   :  { %1993 = vset.pattern.permute.xlu0 %v2115_v8 }
 0x75b   :  { %1082 = vperm.xlu0 %1993, %v2370_v5  }
 0x75c   :  { %1995 = vset.pattern.permute.xlu1 %v2116_v30  ;;  %v1745_v30 = vld [vmem:[%s2769_s10 + $0x3] ss:$0 sm:$0xff] }
 0x75d   :  { %1195 = vperm.xlu1 %1995, %v2370_v5  }
 0x75f   :  { %1999 = vset.pattern.permute.xlu0 %v2117_v9 }
 0x761   :  { %1198 = vperm.xlu1 %1995, %v2365_v4  }
 0x765   :  { %1996 = vset.pattern.permute.xlu1 %v2118_v29 }
 0x766   :  { %1308 = vperm.xlu1 %1996, %v2370_v5  }
 0x76a   :  { %1311 = vperm.xlu1 %1996, %v2365_v4  }
 0x76e   :  { %1997 = vset.pattern.permute.xlu1 %v2119_v10 }
 0x76f   :  { %1421 = vperm.xlu1 %1997, %v2370_v5  }
 0x773   :  { %1424 = vperm.xlu1 %1997, %v2365_v4  }
 0x777   :  { %1998 = vset.pattern.permute.xlu1 %v2117_v9 }
 0x778   :  { %1534 = vperm.xlu1 %1998, %v2370_v5  }
 0x7bb   :  { %v519_v16 = vpop.xlane.xlu0 %518 }
 0x7bc   :  { %v520_v18 = vcvt.f32.s32 %v519_v16  ;;  %v2024_v16 = vld [vmem:[%s2767_s9 + $0x10] ss:$36 sps:$4 sm:$0xff]  }
 0x7bd   :  { %v534_v19 = vpop.xlane.xlu1 %533 }
 0x7be   :  { %v523_v22 = vadd.s32 %v522_v17, %v520_v18  ;;  %v535_v24 = vcvt.f32.s32 %v534_v19  ;;  %v2027_v18 = vld [vmem:[%s2767_s9 + $0xc] ss:$36 sps:$4 sm:$0xff]   ;;  %v2028_v19 = vld [vmem:[%s2767_s9 + $0x18] ss:$36 sps:$4 sm:$0xff]  }
 0x7bf   :  { %v399_v25 = vpop.xlane.xlu0 %398 }
 0x7c0   :  { %vm539_vm1 = vcmp.eq.s32.totalorder %v2246_v45, %v523_v22  ;;  %v538_v26 = vadd.s32 %v537_v21, %v535_v24  ;;  %v400_v27 = vrot.slane %v399_v25, 4  ;;  %v2029_v21 = vld [vmem:[%s2767_s9 + $0x54] ss:$36 sps:$4 sm:$0xff]   ;;  %v2030_v22 = vld [vmem:[%s2767_s9 + $0x60] ss:$36 sps:$4 sm:$0xff]  }
 0x7c1   :  { %v412_v28 = vpop.xlane.xlu1 %411  ;;  %v1718_v33 = vsel %vm539_vm1, 1.0, %v2109_v0  ;;  %v2031_v24 = vld [vmem:[%s2767_s9 + $0x14] ss:$36 sps:$4 sm:$0xff]  }
 0x7c2   :  { %vm540_vm3 = vcmp.eq.s32.totalorder %v2246_v45, %v538_v26  ;;  %v401_v31 = vadd.f32 %v400_v27, %v399_v25  ;;  %v413_v32 = vrot.slane %v412_v28, 4  ;;  %v2032_v25 = vld [vmem:[%s2767_s9 + $0x20] ss:$36 sps:$4 sm:$0xff]   ;;  %v2034_v27 = vld [vmem:[%s2767_s9 + $0x68] ss:$36 sps:$4 sm:$0xff]  }
 0x7c3   :  { %v1719_v34 = vsel %vm540_vm3, 1.0, %v2109_v0  ;;  %v629_v35 = vpop.xlane.xlu0 %628  ;;  %v2033_v26 = vld [vmem:[%s2767_s9 + $0x5c] ss:$36 sps:$4 sm:$0xff]  }
 0x7c4   :  { %v545_v37 = vpack.c.bf16 %v1719_v34, %v1718_v33  ;;  %v402_v38 = vrot.slane %v401_v31, 2  ;;  %v414_v39 = vadd.f32 %v413_v32, %v412_v28  ;;  %v630_v40 = vrot.slane %v629_v35, 4  ;;  %v2035_v28 = vld [vmem:[%s2767_s9 + $0x1c] ss:$36 sps:$4 sm:$0xff]  }
 0x7c5   :  { %v641_v41 = vpop.xlane.xlu1 %640  ;;  %v2120_v32 = vmov 8  }
 0x7c6   :  { %v631_v42 = vadd.f32 %v630_v40, %v629_v35  ;;  %v642_v43 = vrot.slane %v641_v41, 4  ;;  %1874 = vmatmul.mubr.msk.bf16.vlgmr.msra.gmra.mrb[8].mxu1 %vm150_vm4, %v545_v37  ;;  %v403_v44 = vadd.f32 %v402_v38, %v401_v31  ;;  %v415_v47 = vrot.slane %v414_v39, 2  ;;  %v2036_v31 = vld [vmem:[%s2767_s9 + $0x64] ss:$36 sps:$4 sm:$0xff]   ;;  %2000 = vset.pattern.permute.xlu1 %v2120_v32  ;;  %v1741_v37 = vld [vmem:[%s2769_s10 + $0x2] ss:$0 sm:$0xff] }
 0x7c7   :  { %1894 = vmatpush3.bf16.msra.mxu1 %v2019_v36  ;;  %1897 = vmatprep.mubr.msk.bf16.mxu1 %vm2111_vm2, %v2109_v0  ;;  %v1733_v36 = vld [vmem:[%s2769_s10] ss:$0 sm:$0xff] }
 0x7c8   :  { %v632_v48 = vrot.slane %v631_v42, 2  ;;  %v643_v50 = vadd.f32 %v642_v43, %v641_v41  ;;  %v404_v51 = vrot.slane %v403_v44, 1  ;;  %v416_v52 = vadd.f32 %v415_v47, %v414_v39  ;;  %1895 = vmatprep.subr.bf16.mxu1 %v2109_v0 }
 0x7c9   :  { %v747_v34 = vpop.permute.xlu1 %746 }
 0x7ca   :  { %v405_v53 = vadd.f32 %v404_v51, %v403_v44  ;;  %v417_v54 = vrot.slane %v416_v52, 1  ;;  %v633_v55 = vadd.f32 %v632_v48, %v631_v42  ;;  %v644_v56 = vrot.slane %v643_v50, 2 }
 0x7cb   :  { %1896 = vmatpush3.bf16.msra.mxu1 %v2021_v1  ;;  %v744_v33 = vpop.permute.xlu0 %743  ;;  %vm749_vm4 = vcmp.eq.s32.totalorder %v2246_v45, %v747_v34 }
 0x7cc   :  { %1949 = vpush %v405_v53  ;;  %v418_v57 = vadd.f32 %v417_v54, %v416_v52  ;;  %v634_v58 = vrot.slane %v633_v55, 1  ;;  %v645_v59 = vadd.f32 %v644_v56, %v643_v50  ;;  %1909 = vmatprep.subr.bf16.mxu1 %v2109_v0 }
 0x7cd   :  { %v2473_v38 = vpop.permute.xlu1 %856 }
 0x7ce   :  { %1951 = vpush %v418_v57  ;;  %v635_v60 = vadd.f32 %v634_v58, %v633_v55  ;;  %v646_v61 = vrot.slane %v645_v59, 1  ;;  %vm861_vm8 = vcmp.eq.s32.totalorder %v2246_v45, %v2473_v38 }
 0x7d0   :  { %1953 = vpush %v635_v60  ;;  %v647_v62 = vadd.f32 %v646_v61, %v645_v59  ;;  %v860_v35 = vpop.permute.xlu0 %859  ;;  %v1737_v61 = vld [vmem:[%s2769_s10 + $0x1] ss:$0 sm:$0xff] }
 0x7d1   :  { %vm862_vm7 = vcmp.eq.s32.totalorder %v2246_v45, %v860_v35 }
 0x7d2   :  { %1955 = vpush %v647_v62  ;;  %v970_v54 = vpop.permute.xlu1 %969 }
 0x7d3   :  { %vm974_vm6 = vcmp.eq.s32.totalorder %v2246_v45, %v970_v54 }
 0x7d5   :  { %v973_v52 = vpop.permute.xlu0 %972 }
 0x899   :  { %v616_v11 = vpop.f32.mrb[8].mxu1 }
 0x89a   :  { %v650_v12 = vadd.f32 %v616_v11, %v2289_v20  ;;  %v1875_v13 = vpop.f32.mrb[9].mxu1  ;;  %v2025_v20 = vld [vmem:[%s2767_s9 + $0x4c] ss:$36 sps:$4 sm:$0xff]  }
 0x89b   :  { %v619_v49 = vpop.f32.mrb[10].mxu1 }
 0x89c   :  { %v651_v46 = vadd.f32 %v619_v49, %v2293_v23  ;;  %v1876_v14 = vpop.f32.mrb[11].mxu1  ;;  %v2026_v23 = vld [vmem:[%s2767_s9 + $0x58] ss:$36 sps:$4 sm:$0xff]  }
 0x89e   :  { %v652_v17 = vpack.c.bf16 %v651_v46, %v650_v12 }
 0x8a0   :  { %1882 = vmatmul.mubr.msk.bf16.vlgmr.msra.gmra.mrb[12].mxu0 %vm214_vm5, %v652_v17  ;;  %1898 = vmatmul.mubr.msk.bf16.vlgmr.msra.gmra.mrb[12].mxu1 %vm214_vm5, %v652_v17 }
 0x8a1   :  { %1886 = vmatpush3.bf16.msra.mxu0 %v2023_v15  ;;  %1910 = vmatpush3.bf16.msra.mxu1 %v2024_v16  ;;  %v1749_v16 = vld [vmem:[%s2769_s10 + $0x4] ss:$0 sm:$0xff] }
 0x8a2   :  { %1887 = vmatprep.subr.bf16.mxu0 %v2109_v0  ;;  %1911 = vmatprep.subr.bf16.mxu1 %v2109_v0 }
 0x8a3   :  { %1889 = vmatprep.mubr.msk.bf16.mxu0 %vm2111_vm2, %v2109_v0  ;;  %1913 = vmatprep.mubr.msk.bf16.mxu1 %vm2111_vm2, %v2109_v0 }
 0x8a5   :  { %1888 = vmatpush3.bf16.msra.mxu0 %v2025_v20  ;;  %1912 = vmatpush3.bf16.msra.mxu1 %v2026_v23 }
 0x8a6   :  { %1901 = vmatprep.subr.bf16.mxu0 %v2109_v0  ;;  %1925 = vmatprep.subr.bf16.mxu1 %v2109_v0 }
 0x8a8   :  { %1890 = vmatmul.mubr.msk.bf16.vlgmr.msra.gmra.mrb[16].mxu0 %vm214_vm5, %v652_v17  ;;  %1914 = vmatmul.mubr.msk.bf16.vlgmr.msra.gmra.mrb[16].mxu1 %vm214_vm5, %v652_v17 }
 0x8a9   :  { %1902 = vmatpush3.bf16.msra.mxu0 %v2027_v18  ;;  %1926 = vmatpush3.bf16.msra.mxu1 %v2028_v19 }
 0x8aa   :  { %1903 = vmatprep.subr.bf16.mxu0 %v2109_v0  ;;  %1927 = vmatprep.subr.bf16.mxu1 %v2109_v0 }
 0x8ab   :  { %1905 = vmatprep.mubr.msk.bf16.mxu0 %vm2111_vm2, %v2109_v0  ;;  %1929 = vmatprep.mubr.msk.bf16.mxu1 %vm2111_vm2, %v2109_v0 }
 0x8ad   :  { %1904 = vmatpush3.bf16.msra.mxu0 %v2029_v21  ;;  %1928 = vmatpush3.bf16.msra.mxu1 %v2030_v22 }
 0x8ae   :  { %1917 = vmatprep.subr.bf16.mxu0 %v2109_v0  ;;  %1941 = vmatprep.subr.bf16.mxu1 %v2109_v0 }
 0x8b0   :  { %1906 = vmatmul.mubr.msk.bf16.vlgmr.msra.gmra.mrb[20].mxu0 %vm214_vm5, %v652_v17  ;;  %1930 = vmatmul.mubr.msk.bf16.vlgmr.msra.gmra.mrb[20].mxu1 %vm214_vm5, %v652_v17 }
 0x8b1   :  { %1918 = vmatpush3.bf16.msra.mxu0 %v2031_v24  ;;  %1942 = vmatpush3.bf16.msra.mxu1 %v2032_v25 }
 0x8b2   :  { %1919 = vmatprep.subr.bf16.mxu0 %v2109_v0  ;;  %1943 = vmatprep.subr.bf16.mxu1 %v2109_v0 }
 0x8b3   :  { %1921 = vmatprep.mubr.msk.bf16.mxu0 %vm2111_vm2, %v2109_v0  ;;  %1945 = vmatprep.mubr.msk.bf16.mxu1 %vm2111_vm2, %v2109_v0 }
 0x8b5   :  { %1920 = vmatpush3.bf16.msra.mxu0 %v2033_v26  ;;  %1944 = vmatpush3.bf16.msra.mxu1 %v2034_v27 }
 0x8b6   :  { %1933 = vmatprep.subr.bf16.mxu0 %v2109_v0 }
 0x8b8   :  { %1922 = vmatmul.mubr.msk.bf16.vlgmr.msra.gmra.mrb[24].mxu0 %vm214_vm5, %v652_v17  ;;  %1946 = vmatmul.mubr.msk.bf16.vlgmr.msra.gmra.mrb[24].mxu1 %vm214_vm5, %v652_v17 }
 0x8b9   :  { %1934 = vmatpush3.bf16.msra.mxu0 %v2035_v28  ;;  %1937 = vmatprep.mubr.msk.bf16.mxu0 %vm2111_vm2, %v2109_v0  ;;  %vm748_vm2 = vcmp.eq.s32.totalorder %v2246_v45, %v744_v33 }
 0x8ba   :  { %1935 = vmatprep.subr.bf16.mxu0 %v2109_v0 }
 0x8bd   :  { %1936 = vmatpush3.bf16.msra.mxu0 %v2036_v31  ;;  %v1761_v31 = vld [vmem:[%s2769_s10 + $0x7] ss:$0 sm:$0xff] }
 0x8c0   :  { %1938 = vmatmul.mubr.msk.bf16.vlgmr.msra.gmra.mrb[28].mxu0 %vm214_vm5, %v652_v17  ;;  %vm975_vm5 = vcmp.eq.s32.totalorder %v2246_v45, %v973_v52  ;;  %v1765_v17 = vld [vmem:[%s2769_s10 + $0x8] ss:$0 sm:$0xff] }
 0x973   :  { %v715_v0 = vpop.f32.mrb[12].mxu0  ;;  %v941_v39 = vpop.f32.mrb[12].mxu1 }
 0x974   :  { %v2475_v40 = vadd.f32 %v1733_v36, %v715_v0  ;;  %v2477_v41 = vadd.f32 %v1741_v37, %v941_v39  ;;  %v1883_v42 = vpop.f32.mrb[13].mxu0  ;;  %v1899_v43 = vpop.f32.mrb[13].mxu1  ;;  %v1757_v39 = vld [vmem:[%s2769_s10 + $0x6] ss:$0 sm:$0xff] }
 0x975   :  { %v718_v44 = vpop.f32.mrb[14].mxu0  ;;  %v944_v47 = vpop.f32.mrb[14].mxu1 }
 0x976   :  { %v2480_v48 = vadd.f32 %v1733_v36, %v718_v44  ;;  %948 = vmax.xlane.f32.xlu1 %v2477_v41  ;;  %v1900_v50 = vpop.f32.mrb[15].mxu1  ;;  %722 = vmax.xlane.f32.xlu0 %v2475_v40  ;;  %v1884_v51 = vpop.f32.mrb[15].mxu0  ;;  %v2486_v55 = vadd.f32 %v1741_v37, %v944_v47  ;;  %v750_v56 = vsel %vm748_vm2, %v2475_v40, 0.0  ;;  %v976_v1 = vsel %vm974_vm6, %v2477_v41, 0.0  ;;  %v1753_v47 = vld [vmem:[%s2769_s10 + $0x5] ss:$0 sm:$0xff]  ;;  %s1950_s10 = spop %1949 }
 0x977   :  { %s1952_s3 = spop %1951  ;;  %vm1678_vm6 = vcmp.eq.s32.totalorder %v2246_v45, 1 }
 0x978   :  { %v751_v53 = vsel %vm749_vm4, %v2480_v48, 0.0  ;;  %v977_v2 = vsel %vm975_vm5, %v2486_v55, 0.0  ;;  %s1954_s15 = spop %1953  ;;  %s420_s26 = sadd.f32 %s1952_s3, %s1950_s10 }
 0x979   :  { %s1956_s16 = spop %1955 }
 0x97a   :  { %752 = vadd.xlane.f32.xlu1 %v750_v56  ;;  %754 = vadd.xlane.f32.xlu0 %v751_v53  ;;  %v1083_v53 = vpop.permute.xlu0 %1082  ;;  %v1086_v56 = vpop.permute.xlu1 %1085  ;;  %s649_s27 = sadd.f32 %s1956_s16, %s1954_s15 }
 0x97b   :  { %v828_v57 = vpop.f32.mrb[16].mxu0  ;;  %v1167_v58 = vpop.f32.mrb[16].mxu1  ;;  %vm1087_vm9 = vcmp.eq.s32.totalorder %v2246_v45, %v1083_v53  ;;  %vm1088_vm10 = vcmp.eq.s32.totalorder %v2246_v45, %v1086_v56 }
 0x97c   :  { %v1891_v59 = vpop.f32.mrb[17].mxu0  ;;  %v1915_v60 = vpop.f32.mrb[17].mxu1  ;;  %v2508_v15 = vadd.f32 %v1737_v61, %v828_v57  ;;  %v2517_v18 = vadd.f32 %v1749_v16, %v1167_v58 }
 0x97d   :  { %v831_v62 = vpop.f32.mrb[18].mxu0  ;;  %v1170_v63 = vpop.f32.mrb[18].mxu1 }
 0x97e   :  { %v2497_v3 = vadd.f32 %v1737_v61, %v831_v62  ;;  %v1916_v6 = vpop.f32.mrb[19].mxu1  ;;  %978 = vadd.xlane.f32.xlu1 %v976_v1  ;;  %980 = vadd.xlane.f32.xlu0 %v977_v2  ;;  %v1892_v7 = vpop.f32.mrb[19].mxu0  ;;  %v863_v28 = vsel %vm861_vm8, %v2508_v15, 0.0  ;;  %v2535_v38 = vadd.f32 %v1749_v16, %v1170_v63 }
 0x97f   :  { %v2567_v57 = vpop.permute.xlu1 %1195 }
 0x980   :  { %v864_v8 = vsel %vm862_vm7, %v2497_v3, 0.0  ;;  %vm1200_vm12 = vcmp.eq.s32.totalorder %v2246_v45, %v2567_v57  ;;  %vm1681_vm7 = vcmp.eq.s32.totalorder %v2246_v45, 2 }
 0x982   :  { %724 = vmax.xlane.f32.xlu1 %v2480_v48  ;;  %867 = vadd.xlane.f32.xlu0 %v864_v8 }
 0x983   :  { %v1054_v9 = vpop.f32.mrb[20].mxu0  ;;  %v1393_v29 = vpop.f32.mrb[20].mxu1 }
 0x984   :  { %v2504_v10 = vadd.f32 %v1745_v30, %v1054_v9  ;;  %v1907_v11 = vpop.f32.mrb[21].mxu0  ;;  %v1931_v12 = vpop.f32.mrb[21].mxu1  ;;  %v2541_v42 = vadd.f32 %v1757_v39, %v1393_v29 }
 0x985   :  { %v1057_v13 = vpop.f32.mrb[22].mxu0  ;;  %v1396_v49 = vpop.f32.mrb[22].mxu1 }
 0x986   :  { %v1932_v46 = vpop.f32.mrb[23].mxu1  ;;  %950 = vmax.xlane.f32.xlu1 %v2486_v55  ;;  %1061 = vmax.xlane.f32.xlu0 %v2504_v10  ;;  %v1908_v14 = vpop.f32.mrb[23].mxu0  ;;  %v2544_v43 = vadd.f32 %v1745_v30, %v1057_v13  ;;  %v2547_v44 = vadd.f32 %v1757_v39, %v1396_v49  ;;  %v1089_v54 = vsel %vm1087_vm9, %v2504_v10, 0.0 }
 0x987   :  { %v2569_v58 = vpop.permute.xlu1 %1198 }
 0x988   :  { %vm1201_vm11 = vcmp.eq.s32.totalorder %v2246_v45, %v2569_v58 }
 0x98a   :  { %835 = vmax.xlane.f32.xlu1 %v2508_v15 }
 0x98b   :  { %v1280_v20 = vpop.f32.mrb[24].mxu0  ;;  %v1619_v23 = vpop.f32.mrb[24].mxu1 }
 0x98c   :  { %v2519_v19 = vadd.f32 %v1765_v17, %v1619_v23  ;;  %v1923_v21 = vpop.f32.mrb[25].mxu0  ;;  %v1947_v22 = vpop.f32.mrb[25].mxu1  ;;  %v2553_v50 = vadd.f32 %v1753_v47, %v1280_v20  ;;  %v1090_v20 = vsel %vm1088_vm10, %v2544_v43, 0.0 }
 0x98d   :  { %v1283_v24 = vpop.f32.mrb[26].mxu0  ;;  %v1622_v25 = vpop.f32.mrb[26].mxu1 }
 0x98e   :  { %v1948_v26 = vpop.f32.mrb[27].mxu1  ;;  %1174 = vmax.xlane.f32.xlu1 %v2517_v18  ;;  %1626 = vmax.xlane.f32.xlu0 %v2519_v19  ;;  %v1924_v27 = vpop.f32.mrb[27].mxu0  ;;  %v2556_v51 = vadd.f32 %v1753_v47, %v1283_v24  ;;  %v2560_v52 = vadd.f32 %v1765_v17, %v1622_v25 }
 0x98f   :  { %v2572_v59 = vpop.permute.xlu1 %1308 }
 0x990   :  { %vm1313_vm14 = vcmp.eq.s32.totalorder %v2246_v45, %v2572_v59 }
 0x991   :  { %v1315_v57 = vsel %vm1313_vm14, %v2553_v50, 0.0 }
 0x992   :  { %865 = vadd.xlane.f32.xlu1 %v863_v28 }
 0x993   :  { %v1506_v33 = vpop.f32.mrb[28].mxu0 }
 0x994   :  { %v2529_v34 = vadd.f32 %v1761_v31, %v1506_v33  ;;  %v1939_v35 = vpop.f32.mrb[29].mxu0 }
 0x995   :  { %v1509_v36 = vpop.f32.mrb[30].mxu0 }
 0x996   :  { %v2531_v37 = vadd.f32 %v1761_v31, %v1509_v36  ;;  %837 = vmax.xlane.f32.xlu1 %v2497_v3  ;;  %1513 = vmax.xlane.f32.xlu0 %v2529_v34  ;;  %v1940_v0 = vpop.f32.mrb[31].mxu0 }
 0x99a   :  { %1176 = vmax.xlane.f32.xlu1 %v2535_v38 }
 0x99e   :  { %1400 = vmax.xlane.f32.xlu1 %v2541_v42 }
 0x9a2   :  { %1063 = vmax.xlane.f32.xlu1 %v2544_v43 }
 0x9a6   :  { %1402 = vmax.xlane.f32.xlu1 %v2547_v44 }
 0x9aa   :  { %1287 = vmax.xlane.f32.xlu1 %v2553_v50 }
 0x9ac   :  { %1537 = vperm.xlu0 %1999, %v2365_v4  }
 0x9ae   :  { %1289 = vmax.xlane.f32.xlu1 %v2556_v51 }
 0x9b0   :  { %2001 = vset.pattern.permute.xlu0 %v2120_v32  ;;  %v2574_v32 = vpop.permute.xlu1 %1311 }
 0x9b1   :  { %vm1314_vm13 = vcmp.eq.s32.totalorder %v2246_v45, %v2574_v32 }
 0x9b2   :  { %1628 = vmax.xlane.f32.xlu1 %v2560_v52 }
 0x9b4   :  { %v2576_v60 = vpop.permute.xlu1 %1421 }
 0x9b5   :  { %vm1426_vm1 = vcmp.eq.s32.totalorder %v2246_v45, %v2576_v60 }
 0x9c3   :  { %1647 = vperm.xlu1 %2000, %v2370_v5   ;;  %v2579_v5 = vpop.permute.xlu1 %1424 }
 0x9c4   :  { %vm1427_vm0 = vcmp.eq.s32.totalorder %v2246_v45, %v2579_v5 }
 0x9c7   :  { %v2581_v61 = vpop.permute.xlu1 %1534 }
 0x9c8   :  { %vm1539_vm3 = vcmp.eq.s32.totalorder %v2246_v45, %v2581_v61 }
 0x9c9   :  { %v1541_v58 = vsel %vm1539_vm3, %v2529_v34, 0.0 }
 0x9cb   :  { %1091 = vadd.xlane.f32.xlu0 %v1089_v54 }
 0x9e7   :  { %1515 = vmax.xlane.f32.xlu1 %v2531_v37 }
 0x9f8   :  { %1650 = vperm.xlu1 %2000, %v2365_v4  }
 0xa03   :  { %v2583_v62 = vpop.xlane.xlu1 %948  ;;  %v2585_v63 = vpop.xlane.xlu0 %722 }
 0xa04   :  { %v726_v1 = vsub.f32 %v2475_v40, %v2585_v63  ;;  %v952_v4 = vsub.f32 %v2477_v41, %v2583_v62 }
 0xa06   :  { %v728_v2 = vmul.f32 1.442695, %v726_v1  ;;  %v954_v29 = vmul.f32 1.442695, %v952_v4 }
 0xa07   :  { %v2589_v6 = vpop.xlane.xlu1 %752  ;;  %v2591_v7 = vpop.xlane.xlu0 %754 }
 0xa08   :  { %2037 = vpow2.f32 %v728_v2 }
 0xa09   :  { %2039 = vpow2.f32 %v954_v29 }
 0xa0b   :  { %v2593_v8 = vpop.xlane.xlu1 %978  ;;  %v2597_v30 = vpop.xlane.xlu0 %980 }
 0xa0f   :  { %v2599_v9 = vpop.xlane.xlu1 %724  ;;  %v2603_v12 = vpop.xlane.xlu0 %867 }
 0xa10   :  { %v727_v11 = vsub.f32 %v2480_v48, %v2599_v9 }
 0xa12   :  { %v2038_v40 = vpop.eup %2037  ;;  %v730_v49 = vmul.f32 1.442695, %v727_v11 }
 0xa13   :  { %v2605_v13 = vpop.xlane.xlu1 %950  ;;  %732 = vadd.xlane.f32.xlu0 %v2038_v40  ;;  %v2612_v16 = vpop.xlane.xlu0 %1061 }
 0xa14   :  { %v953_v46 = vsub.f32 %v2486_v55, %v2605_v13  ;;  %2041 = vpow2.f32 %v730_v49  ;;  %v1065_v23 = vsub.f32 %v2504_v10, %v2612_v16  ;;  %v2040_v24 = vpop.eup %2039 }
 0xa16   :  { %v956_v14 = vmul.f32 1.442695, %v953_v46  ;;  %v1067_v26 = vmul.f32 1.442695, %v1065_v23 }
 0xa17   :  { %v2609_v41 = vpop.xlane.xlu1 %835 }
 0xa18   :  { %v839_v48 = vsub.f32 %v2508_v15, %v2609_v41  ;;  %2043 = vpow2.f32 %v956_v14 }
 0xa1a   :  { %v841_v21 = vmul.f32 1.442695, %v839_v48 }
 0xa1b   :  { %v2616_v17 = vpop.xlane.xlu1 %1174  ;;  %v2645_v40 = vpop.xlane.xlu0 %1626 }
 0xa1c   :  { %v1178_v55 = vsub.f32 %v2517_v18, %v2616_v17  ;;  %1093 = vadd.xlane.f32.xlu1 %v1090_v20  ;;  %v1630_v48 = vsub.f32 %v2519_v19, %v2645_v40 }
 0xa1e   :  { %v1180_v22 = vmul.f32 1.442695, %v1178_v55  ;;  %v2042_v15 = vpop.eup %2041 }
 0xa1f   :  { %v2623_v25 = vpop.xlane.xlu1 %865 }
 0xa20   :  { %2045 = vpow2.f32 %v1180_v22  ;;  %958 = vadd.xlane.f32.xlu1 %v2040_v24 }
 0xa21   :  { %2047 = vpow2.f32 %v841_v21  ;;  %v1632_v21 = vmul.f32 1.442695, %v1630_v48 }
 0xa22   :  { %2049 = vpow2.f32 %v1067_v26  ;;  %v2044_v31 = vpop.eup %2043 }
 0xa23   :  { %v2625_v27 = vpop.xlane.xlu1 %837  ;;  %v2657_v24 = vpop.xlane.xlu0 %1513 }
 0xa24   :  { %v840_v10 = vsub.f32 %v2497_v3, %v2625_v27  ;;  %734 = vadd.xlane.f32.xlu1 %v2042_v15 }
 0xa26   :  { %v843_v28 = vmul.f32 1.442695, %v840_v10 }
 0xa27   :  { %v2629_v33 = vpop.xlane.xlu1 %1176 }
 0xa28   :  { %2051 = vpow2.f32 %v843_v28  ;;  %v1179_v35 = vsub.f32 %v2535_v38, %v2629_v33  ;;  %960 = vadd.xlane.f32.xlu1 %v2044_v31  ;;  %v1517_v28 = vsub.f32 %v2529_v34, %v2657_v24 }
 0xa2a   :  { %v2046_v36 = vpop.eup %2045  ;;  %v1182_v0 = vmul.f32 1.442695, %v1179_v35 }
 0xa2b   :  { %v2048_v39 = vpop.eup %2047  ;;  %v2633_v47 = vpop.xlane.xlu1 %1400  ;;  %1184 = vadd.xlane.f32.xlu0 %v2046_v36 }
 0xa2c   :  { %2053 = vpow2.f32 %v1182_v0  ;;  %v1404_v3 = vsub.f32 %v2541_v42, %v2633_v47  ;;  %845 = vadd.xlane.f32.xlu1 %v2048_v39  ;;  %v2050_v53 = vpop.eup %2049  ;;  %v1519_v0 = vmul.f32 1.442695, %v1517_v28 }
 0xa2e   :  { %v1406_v54 = vmul.f32 1.442695, %v1404_v3 }
 0xa2f   :  { %v2637_v56 = vpop.xlane.xlu1 %1063  ;;  %1071 = vadd.xlane.f32.xlu0 %v2050_v53 }
 0xa30   :  { %2055 = vpow2.f32 %v1406_v54  ;;  %v1066_v1 = vsub.f32 %v2544_v43, %v2637_v56 }
 0xa32   :  { %v2052_v2 = vpop.eup %2051  ;;  %v1069_v4 = vmul.f32 1.442695, %v1066_v1 }
 0xa33   :  { %v2641_v29 = vpop.xlane.xlu1 %1402  ;;  %847 = vadd.xlane.f32.xlu1 %v2052_v2  ;;  %v1203_v2 = vsel %vm1201_vm11, %v2535_v38, 0.0  ;;  %v1429_v38 = vsel %vm1427_vm0, %v2547_v44, 0.0 }
 0xa34   :  { %2057 = vpow2.f32 %v1069_v4  ;;  %v1405_v11 = vsub.f32 %v2547_v44, %v2641_v29  ;;  %v1202_v4 = vsel %vm1200_vm12, %v2517_v18, 0.0  ;;  %v1428_v18 = vsel %vm1426_vm1, %v2541_v42, 0.0  ;;  %v1538_v42 = vpop.permute.xlu0 %1537 }
 0xa35   :  { %vm1540_vm4 = vcmp.eq.s32.totalorder %v2246_v45, %v1538_v42 }
 0xa36   :  { %v2054_v49 = vpop.eup %2053  ;;  %v1408_v46 = vmul.f32 1.442695, %v1405_v11  ;;  %v1316_v11 = vsel %vm1314_vm13, %v2556_v51, 0.0  ;;  %v1542_v34 = vsel %vm1540_vm4, %v2531_v37, 0.0 }
 0xa37   :  { %v2647_v14 = vpop.xlane.xlu1 %1287  ;;  %1186 = vadd.xlane.f32.xlu1 %v2054_v49 }
 0xa38   :  { %2059 = vpow2.f32 %v1408_v46  ;;  %v1291_v43 = vsub.f32 %v2553_v50, %v2647_v14 }
 0xa3a   :  { %v2056_v20 = vpop.eup %2055  ;;  %v1293_v23 = vmul.f32 1.442695, %v1291_v43 }
 0xa3b   :  { %v2653_v55 = vpop.xlane.xlu1 %1289  ;;  %1410 = vadd.xlane.f32.xlu0 %v2056_v20 }
 0xa3c   :  { %2061 = vpow2.f32 %v1293_v23  ;;  %v1292_v22 = vsub.f32 %v2556_v51, %v2653_v55 }
 0xa3d   :  { %2063 = vpow2.f32 %v1632_v21 }
 0xa3e   :  { %v2058_v26 = vpop.eup %2057  ;;  %v1295_v15 = vmul.f32 1.442695, %v1292_v22 }
 0xa3f   :  { %v2659_v10 = vpop.xlane.xlu1 %1628  ;;  %1073 = vadd.xlane.f32.xlu1 %v2058_v26 }
 0xa40   :  { %v1631_v31 = vsub.f32 %v2560_v52, %v2659_v10  ;;  %2065 = vpow2.f32 %v1295_v15 }
 0xa42   :  { %v2060_v35 = vpop.eup %2059  ;;  %v1634_v36 = vmul.f32 1.442695, %v1631_v31 }
 0xa43   :  { %1412 = vadd.xlane.f32.xlu1 %v2060_v35  ;;  %v1648_v51 = vpop.permute.xlu1 %1647 }
 0xa44   :  { %2067 = vpow2.f32 %v1634_v36  ;;  %vm1652_vm2 = vcmp.eq.s32.totalorder %v2246_v45, %v1648_v51 }
 0xa45   :  { %2069 = vpow2.f32 %v1519_v0  ;;  %v1654_v44 = vsel %vm1652_vm2, %v2519_v19, 0.0 }
 0xa46   :  { %v2062_v39 = vpop.eup %2061 }
 0xa47   :  { %1297 = vadd.xlane.f32.xlu0 %v2062_v39  ;;  %v2064_v3 = vpop.eup %2063 }
 0xa4a   :  { %v2066_v53 = vpop.eup %2065 }
 0xa4b   :  { %1636 = vadd.xlane.f32.xlu0 %v2064_v3 }
 0xa4e   :  { %v2068_v54 = vpop.eup %2067 }
 0xa4f   :  { %1299 = vadd.xlane.f32.xlu0 %v2066_v53  ;;  %1638 = vadd.xlane.f32.xlu1 %v2068_v54  ;;  %v2070_v1 = vpop.eup %2069 }
 0xa53   :  { %1523 = vadd.xlane.f32.xlu0 %v2070_v1  ;;  %1206 = vadd.xlane.f32.xlu1 %v1203_v2 }
 0xa57   :  { %1204 = vadd.xlane.f32.xlu0 %v1202_v4  ;;  %1319 = vadd.xlane.f32.xlu1 %v1316_v11 }
 0xa58   :  { %v2694_v5 = vpop.xlane.xlu0 %1091 }
 0xa5b   :  { %1317 = vadd.xlane.f32.xlu0 %v1315_v57  ;;  %1432 = vadd.xlane.f32.xlu1 %v1429_v38 }
 0xa5f   :  { %1430 = vadd.xlane.f32.xlu0 %v1428_v18 }
 0xa63   :  { %1543 = vadd.xlane.f32.xlu0 %v1541_v58 }
 0xa67   :  { %1656 = vadd.xlane.f32.xlu0 %v1654_v44 }
 0xa74   :  { %v2688_v50 = vpop.xlane.xlu1 %1515 }
 0xa75   :  { %v1518_v59 = vsub.f32 %v2531_v37, %v2688_v50 }
 0xa77   :  { %v1521_v32 = vmul.f32 1.442695, %v1518_v59 }
 0xa78   :  { %v2696_v61 = vpop.permute.xlu1 %1650 }
 0xa79   :  { %2071 = vpow2.f32 %v1521_v32  ;;  %vm1653_vm5 = vcmp.eq.s32.totalorder %v2246_v45, %v2696_v61 }
 0xa83   :  { %v2072_v60 = vpop.eup %2071 }
 0xa84   :  { %1525 = vadd.xlane.f32.xlu1 %v2072_v60 }
 0xa88   :  { %1545 = vadd.xlane.f32.xlu1 %v1542_v34 }
 0xaa0   :  { %v733_v19 = vpop.xlane.xlu0 %732 }
 0xaa1   :  { %2073 = vlog2.f32 %v733_v19 }
 0xaa9   :  { %v2698_v49 = vpop.xlane.xlu1 %1093 }
 0xaab   :  { %v2074_v43 = vpop.eup %2073 }
 0xaac   :  { %v737_v23 = vmul.f32 0.6931472, %v2074_v43 }
 0xaad   :  { %v959_v46 = vpop.xlane.xlu1 %958 }
 0xaae   :  { %2075 = vlog2.f32 %v959_v46  ;;  %v740_v37 = vadd.f32 %v737_v23, %v2585_v63 }
 0xab0   :  { %v756_v0 = vsub.f32 %v740_v37, %v2589_v6 }
 0xab1   :  { %v735_v48 = vpop.xlane.xlu1 %734 }
 0xab2   :  { %2077 = vlog2.f32 %v735_v48  ;;  %v758_v63 = vsel %vm407_vm15, %v756_v0, 0.0 }
 0xab5   :  { %v961_v20 = vpop.xlane.xlu1 %960 }
 0xab6   :  { %2079 = vlog2.f32 %v961_v20  ;;  %v1655_v20 = vsel %vm1653_vm5, %v2560_v52, 0.0 }
 0xab8   :  { %v2076_v21 = vpop.eup %2075  ;;  %v1185_v28 = vpop.xlane.xlu0 %1184 }
 0xab9   :  { %v846_v22 = vpop.xlane.xlu1 %845  ;;  %v963_v26 = vmul.f32 0.6931472, %v2076_v21 }
 0xaba   :  { %2081 = vlog2.f32 %v846_v22 }
 0xabb   :  { %v966_v35 = vadd.f32 %v963_v26, %v2583_v62 }
 0xabc   :  { %v2078_v15 = vpop.eup %2077  ;;  %v1072_v1 = vpop.xlane.xlu0 %1071 }
 0xabd   :  { %v739_v31 = vmul.f32 0.6931472, %v2078_v15  ;;  %v982_v11 = vsub.f32 %v966_v35, %v2593_v8 }
 0xabf   :  { %v741_v36 = vadd.f32 %v739_v31, %v2599_v9  ;;  %v984_v57 = vsel %vm407_vm15, %v982_v11, 0.0 }
 0xac0   :  { %v2080_v39 = vpop.eup %2079  ;;  %v848_v3 = vpop.xlane.xlu1 %847 }
 0xac1   :  { %v965_v53 = vmul.f32 0.6931472, %v2080_v39  ;;  %2083 = vlog2.f32 %v848_v3  ;;  %v757_v54 = vsub.f32 %v741_v36, %v2591_v7 }
 0xac2   :  { %2085 = vlog2.f32 %v1072_v1 }
 0xac3   :  { %v967_v2 = vadd.f32 %v965_v53, %v2605_v13  ;;  %v759_v4 = vsel %vm407_vm15, %v757_v54, 0.0 }
 0xac4   :  { %v2082_v62 = vpop.eup %2081  ;;  %v760_v38 = vadd.f32 %v759_v4, %v758_v63  ;;  %v1187_v18 = vpop.xlane.xlu1 %1186 }
 0xac5   :  { %v983_v6 = vsub.f32 %v967_v2, %v2597_v30  ;;  %v850_v9 = vmul.f32 0.6931472, %v2082_v62 }
 0xac6   :  { %761 = vadd.xlane.f32.xlu1 %v760_v38 }
 0xac7   :  { %v985_v7 = vsel %vm407_vm15, %v983_v6, 0.0  ;;  %v853_v13 = vadd.f32 %v850_v9, %v2609_v41 }
 0xac8   :  { %v986_v51 = vadd.f32 %v985_v7, %v984_v57  ;;  %v1411_v42 = vpop.xlane.xlu0 %1410 }
 0xac9   :  { %v869_v32 = vsub.f32 %v853_v13, %v2623_v25 }
 0xaca   :  { %987 = vadd.xlane.f32.xlu1 %v986_v51 }
 0xacb   :  { %v2084_v58 = vpop.eup %2083  ;;  %v871_v19 = vsel %vm407_vm15, %v869_v32, 0.0 }
 0xacc   :  { %v852_v44 = vmul.f32 0.6931472, %v2084_v58  ;;  %v1074_v59 = vpop.xlane.xlu1 %1073  ;;  %v2086_v30 = vpop.eup %2085 }
 0xacd   :  { %2087 = vlog2.f32 %v1074_v59  ;;  %v1076_v34 = vmul.f32 0.6931472, %v2086_v30 }
 0xace   :  { %v854_v8 = vadd.f32 %v852_v44, %v2625_v27  ;;  %2089 = vlog2.f32 %v1187_v18 }
 0xacf   :  { %2091 = vlog2.f32 %v1185_v28  ;;  %v1079_v25 = vadd.f32 %v1076_v34, %v2612_v16 }
 0xad0   :  { %v870_v60 = vsub.f32 %v854_v8, %v2603_v12  ;;  %v1413_v43 = vpop.xlane.xlu1 %1412 }
 0xad1   :  { %v1095_v37 = vsub.f32 %v1079_v25, %v2694_v5 }
 0xad2   :  { %v872_v41 = vsel %vm407_vm15, %v870_v60, 0.0 }
 0xad3   :  { %v873_v46 = vadd.f32 %v872_v41, %v871_v19  ;;  %v1097_v52 = vsel %vm407_vm15, %v1095_v37, 0.0 }
 0xad4   :  { %v1298_v48 = vpop.xlane.xlu0 %1297 }
 0xad5   :  { %874 = vadd.xlane.f32.xlu1 %v873_v46  ;;  %2093 = vlog2.f32 %v1298_v48 }
 0xad6   :  { %2095 = vlog2.f32 %v1413_v43 }
 0xad7   :  { %v2088_v27 = vpop.eup %2087  ;;  %2097 = vlog2.f32 %v1411_v42 }
 0xad8   :  { %v1078_v12 = vmul.f32 0.6931472, %v2088_v27  ;;  %v2722_v23 = vpop.xlane.xlu0 %1636  ;;  %v2090_v21 = vpop.eup %2089 }
 0xad9   :  { %1658 = vadd.xlane.f32.xlu1 %v1655_v20  ;;  %v2092_v61 = vpop.eup %2091  ;;  %v1191_v28 = vmul.f32 0.6931472, %v2090_v21 }
 0xada   :  { %v1080_v22 = vadd.f32 %v1078_v12, %v2637_v56  ;;  %v1189_v35 = vmul.f32 0.6931472, %v2092_v61 }
 0xadb   :  { %v1193_v56 = vadd.f32 %v1191_v28, %v2629_v33 }
 0xadc   :  { %v1300_v26 = vpop.xlane.xlu0 %1299  ;;  %v2726_v15 = vpop.xlane.xlu1 %1638  ;;  %v1096_v16 = vsub.f32 %v1080_v22, %v2698_v49  ;;  %v1192_v54 = vadd.f32 %v1189_v35, %v2616_v17 }
 0xadd   :  { %2099 = vlog2.f32 %v1300_v26 }
 0xade   :  { %v1098_v31 = vsel %vm407_vm15, %v1096_v16, 0.0 }
 0xadf   :  { %v1099_v36 = vadd.f32 %v1098_v31, %v1097_v52  ;;  %v2094_v3 = vpop.eup %2093 }
 0xae0   :  { %v1524_v0 = vpop.xlane.xlu0 %1523  ;;  %v1207_v39 = vpop.xlane.xlu1 %1206  ;;  %v1302_v49 = vmul.f32 0.6931472, %v2094_v3 }
 0xae1   :  { %1100 = vadd.xlane.f32.xlu0 %v1099_v36  ;;  %v2096_v5 = vpop.eup %2095  ;;  %v1209_v53 = vsub.f32 %v1193_v56, %v1207_v39  ;;  %2101 = vlog2.f32 %v1524_v0 }
 0xae2   :  { %v2098_v1 = vpop.eup %2097  ;;  %v1417_v4 = vmul.f32 0.6931472, %v2096_v5  ;;  %v1305_v33 = vadd.f32 %v1302_v49, %v2647_v14 }
 0xae3   :  { %v1415_v38 = vmul.f32 0.6931472, %v2098_v1  ;;  %v1211_v6 = vsel %vm407_vm15, %v1209_v53, 0.0 }
 0xae4   :  { %v1205_v2 = vpop.xlane.xlu0 %1204  ;;  %v1320_v63 = vpop.xlane.xlu1 %1319  ;;  %v1419_v17 = vadd.f32 %v1417_v4, %v2641_v29 }
 0xae5   :  { %v1208_v11 = vsub.f32 %v1192_v54, %v1205_v2  ;;  %v1418_v59 = vadd.f32 %v1415_v38, %v2633_v47 }
 0xae7   :  { %v2100_v62 = vpop.eup %2099  ;;  %v1210_v9 = vsel %vm407_vm15, %v1208_v11, 0.0 }
 0xae8   :  { %v1304_v57 = vmul.f32 0.6931472, %v2100_v62  ;;  %v1212_v7 = vadd.f32 %v1211_v6, %v1210_v9  ;;  %v1318_v18 = vpop.xlane.xlu0 %1317  ;;  %v1433_v51 = vpop.xlane.xlu1 %1432 }
 0xae9   :  { %v1321_v58 = vsub.f32 %v1305_v33, %v1318_v18  ;;  %v1435_v44 = vsub.f32 %v1419_v17, %v1433_v51 }
 0xaea   :  { %v1306_v13 = vadd.f32 %v1304_v57, %v2653_v55  ;;  %1213 = vadd.xlane.f32.xlu1 %v1212_v7 }
 0xaeb   :  { %v1323_v42 = vsel %vm407_vm15, %v1321_v58, 0.0  ;;  %v1437_v14 = vsel %vm407_vm15, %v1435_v44, 0.0  ;;  %v2102_v41 = vpop.eup %2101 }
 0xaec   :  { %v1322_v8 = vsub.f32 %v1306_v13, %v1320_v63  ;;  %v1431_v32 = vpop.xlane.xlu0 %1430  ;;  %v1528_v47 = vmul.f32 0.6931472, %v2102_v41 }
 0xaed   :  { %v1434_v30 = vsub.f32 %v1418_v59, %v1431_v32 }
 0xaee   :  { %v1324_v60 = vsel %vm407_vm15, %v1322_v8, 0.0  ;;  %v1531_v46 = vadd.f32 %v1528_v47, %v2657_v24 }
 0xaef   :  { %v1436_v34 = vsel %vm407_vm15, %v1434_v30, 0.0  ;;  %v1325_v19 = vadd.f32 %v1324_v60, %v1323_v42 }
 0xaf0   :  { %v1438_v29 = vadd.f32 %v1437_v14, %v1436_v34  ;;  %v1544_v43 = vpop.xlane.xlu0 %1543 }
 0xaf1   :  { %1326 = vadd.xlane.f32.xlu0 %v1325_v19  ;;  %v1547_v27 = vsub.f32 %v1531_v46, %v1544_v43 }
 0xaf2   :  { %1439 = vadd.xlane.f32.xlu1 %v1438_v29 }
 0xaf3   :  { %v1549_v22 = vsel %vm407_vm15, %v1547_v27, 0.0 }
 0xaf4   :  { %v1657_v53 = vpop.xlane.xlu0 %1656 }
 0xb11   :  { %v1526_v55 = vpop.xlane.xlu1 %1525 }
 0xb12   :  { %2103 = vlog2.f32 %v1526_v55 }
 0xb13   :  { %2105 = vlog2.f32 %v2722_v23 }
 0xb14   :  { %2107 = vlog2.f32 %v2726_v15 }
 0xb15   :  { %v1546_v12 = vpop.xlane.xlu1 %1545 }
 0xb1c   :  { %v2104_v48 = vpop.eup %2103 }
 0xb1d   :  { %v1530_v25 = vmul.f32 0.6931472, %v2104_v48 }
 0xb1f   :  { %v1532_v20 = vadd.f32 %v1530_v25, %v2688_v50  ;;  %v2106_v50 = vpop.eup %2105 }
 0xb20   :  { %v2108_v0 = vpop.eup %2107  ;;  %v1641_v56 = vmul.f32 0.6931472, %v2106_v50 }
 0xb21   :  { %v1548_v21 = vsub.f32 %v1532_v20, %v1546_v12  ;;  %v1643_v5 = vmul.f32 0.6931472, %v2108_v0 }
 0xb22   :  { %v1644_v1 = vadd.f32 %v1641_v56, %v2645_v40 }
 0xb23   :  { %v1550_v37 = vsel %vm407_vm15, %v1548_v21, 0.0  ;;  %v1645_v63 = vadd.f32 %v1643_v5, %v2659_v10 }
 0xb24   :  { %v1551_v61 = vadd.f32 %v1550_v37, %v1549_v22  ;;  %v1660_v49 = vsub.f32 %v1644_v1, %v1657_v53  ;;  %v1679_v53 = vstv %s420_s26 }
 0xb26   :  { %1552 = vadd.xlane.f32.xlu0 %v1551_v61  ;;  %v1662_v6 = vsel %vm407_vm15, %v1660_v49, 0.0 }
 0xb53   :  { %v762_v26 = vpop.xlane.xlu1 %761 }
 0xb54   :  { %v763_v24 = vrot.slane %v762_v26, 4 }
 0xb56   :  { %v764_v16 = vadd.f32 %v763_v24, %v762_v26 }
 0xb57   :  { %v988_v28 = vpop.xlane.xlu1 %987 }
 0xb58   :  { %v765_v52 = vrot.slane %v764_v16, 2  ;;  %v989_v31 = vrot.slane %v988_v28, 4 }
 0xb5a   :  { %v766_v35 = vadd.f32 %v765_v52, %v764_v16  ;;  %v990_v39 = vadd.f32 %v989_v31, %v988_v28 }
 0xb5c   :  { %v767_v36 = vrot.slane %v766_v35, 1  ;;  %v991_v54 = vrot.slane %v990_v39, 2 }
 0xb5e   :  { %v768_v3 = vadd.f32 %v767_v36, %v766_v35  ;;  %v992_v11 = vadd.f32 %v991_v54, %v990_v39 }
 0xb60   :  { %1957 = vpush %v768_v3  ;;  %v993_v33 = vrot.slane %v992_v11, 1 }
 0xb62   :  { %v875_v23 = vpop.xlane.xlu1 %874  ;;  %v994_v17 = vadd.f32 %v993_v33, %v992_v11 }
 0xb63   :  { %v876_v15 = vrot.slane %v875_v23, 4 }
 0xb65   :  { %v877_v2 = vadd.f32 %v876_v15, %v875_v23  ;;  %v1682_v23 = vstv %s649_s27 }
 0xb66   :  { %v1659_v4 = vpop.xlane.xlu1 %1658 }
 0xb67   :  { %v878_v62 = vrot.slane %v877_v2, 2  ;;  %v1661_v38 = vsub.f32 %v1645_v63, %v1659_v4 }
 0xb69   :  { %v1663_v9 = vsel %vm407_vm15, %v1661_v38, 0.0  ;;  %v879_v57 = vadd.f32 %v878_v62, %v877_v2  ;;  %vm1675_vm15 = vcmp.eq.s32.totalorder %v2246_v45, 0 }
 0xb6a   :  { %v1664_v7 = vadd.f32 %v1663_v9, %v1662_v6 }
 0xb6b   :  { %v880_v18 = vrot.slane %v879_v57, 1 }
 0xb6c   :  { %1665 = vadd.xlane.f32.xlu1 %v1664_v7 }
 0xb6d   :  { %v881_v51 = vadd.f32 %v880_v18, %v879_v57 }
 0xb6e   :  { %v1101_v40 = vpop.xlane.xlu0 %1100 }
 0xb6f   :  { %v1102_v13 = vrot.slane %v1101_v40, 4  ;;  %1959 = vpush %v881_v51 }
 0xb70   :  { %1961 = vpush %v994_v17 }
 0xb71   :  { %v1103_v10 = vadd.f32 %v1102_v13, %v1101_v40 }
 0xb73   :  { %v1104_v58 = vrot.slane %v1103_v10, 2 }
 0xb75   :  { %v1105_v44 = vadd.f32 %v1104_v58, %v1103_v10 }
 0xb77   :  { %v1214_v59 = vpop.xlane.xlu1 %1213  ;;  %v1106_v8 = vrot.slane %v1105_v44, 1 }
 0xb78   :  { %v1215_v32 = vrot.slane %v1214_v59, 4 }
 0xb79   :  { %v1107_v30 = vadd.f32 %v1106_v8, %v1105_v44 }
 0xb7a   :  { %v1216_v42 = vadd.f32 %v1215_v32, %v1214_v59 }
 0xb7b   :  { %1963 = vpush %v1107_v30 }
 0xb7c   :  { %v1217_v60 = vrot.slane %v1216_v42, 2 }
 0xb7e   :  { %v1327_v14 = vpop.xlane.xlu0 %1326  ;;  %v1218_v34 = vadd.f32 %v1217_v60, %v1216_v42 }
 0xb7f   :  { %v1328_v19 = vrot.slane %v1327_v14, 4  ;;  %v1440_v29 = vpop.xlane.xlu1 %1439 }
 0xb80   :  { %v1441_v55 = vrot.slane %v1440_v29, 4  ;;  %v1219_v41 = vrot.slane %v1218_v34, 1 }
 0xb81   :  { %v1329_v47 = vadd.f32 %v1328_v19, %v1327_v14 }
 0xb82   :  { %v1442_v46 = vadd.f32 %v1441_v55, %v1440_v29  ;;  %v1220_v48 = vadd.f32 %v1219_v41, %v1218_v34 }
 0xb83   :  { %v1330_v43 = vrot.slane %v1329_v47, 2 }
 0xb84   :  { %v1443_v25 = vrot.slane %v1442_v46, 2  ;;  %1965 = vpush %v1220_v48 }
 0xb85   :  { %v1331_v27 = vadd.f32 %v1330_v43, %v1329_v47 }
 0xb86   :  { %v1444_v20 = vadd.f32 %v1443_v25, %v1442_v46 }
 0xb87   :  { %v1332_v12 = vrot.slane %v1331_v27, 1 }
 0xb88   :  { %v1445_v21 = vrot.slane %v1444_v20, 1 }
 0xb89   :  { %v1333_v22 = vadd.f32 %v1332_v12, %v1331_v27 }
 0xb8a   :  { %v1446_v37 = vadd.f32 %v1445_v21, %v1444_v20 }
 0xb8b   :  { %1967 = vpush %v1333_v22 }
 0xb8c   :  { %1969 = vpush %v1446_v37 }
 0xb91   :  { %s1958_s5 = spop %1957 }
 0xba0   :  { %s1960_s17 = spop %1959 }
 0xba1   :  { %s883_s18 = sadd.f32 %s1960_s17, %s1958_s5  ;;  %s1962_s19 = spop %1961 }
 0xba3   :  { %s996_s21 = sadd.f32 %s1962_s19, %s883_s18 }
 0xbac   :  { %s1964_s20 = spop %1963 }
 0xbad   :  { %s1109_s23 = sadd.f32 %s1964_s20, %s996_s21 }
 0xbb3   :  { %v1553_v61 = vpop.xlane.xlu0 %1552 }
 0xbb4   :  { %v1554_v26 = vrot.slane %v1553_v61, 4 }
 0xbb5   :  { %s1966_s22 = spop %1965 }
 0xbb6   :  { %v1555_v24 = vadd.f32 %v1554_v26, %v1553_v61  ;;  %s1222_s24 = sadd.f32 %s1966_s22, %s1109_s23 }
 0xbb8   :  { %v1556_v16 = vrot.slane %v1555_v24, 2 }
 0xbba   :  { %v1557_v28 = vadd.f32 %v1556_v16, %v1555_v24 }
 0xbbc   :  { %v1558_v52 = vrot.slane %v1557_v28, 1  ;;  %s1968_s1 = spop %1967 }
 0xbbd   :  { %s1335_s2 = sadd.f32 %s1968_s1, %s1222_s24  ;;  %s1970_s9 = spop %1969 }
 0xbbe   :  { %v1559_v31 = vadd.f32 %v1558_v52, %v1557_v28 }
 0xbbf   :  { %s1448_s0 = sadd.f32 %s1970_s9, %s1335_s2 }
 0xbc0   :  { %1971 = vpush %v1559_v31 }
 0xbf1   :  { %s1972_s25 = spop %1971 }
 0xbf2   :  { %s1561_s7 = sadd.f32 %s1972_s25, %s1448_s0 }
 0xbf9   :  { %v1666_v35 = vpop.xlane.xlu1 %1665 }
 0xbfa   :  { %v1667_v50 = vrot.slane %v1666_v35, 4 }
 0xbfc   :  { %v1668_v36 = vadd.f32 %v1667_v50, %v1666_v35 }
 0xbfe   :  { %v1669_v0 = vrot.slane %v1668_v36, 2 }
 0xc00   :  { %v1670_v39 = vadd.f32 %v1669_v0, %v1668_v36 }
 0xc02   :  { %v1671_v3 = vrot.slane %v1670_v39, 1 }
 0xc04   :  { %v1672_v56 = vadd.f32 %v1671_v3, %v1670_v39 }
 0xc06   :  { %1973 = vpush %v1672_v56 }
 0xc37   :  { %s1974_s8 = spop %1973 }
 0xc38   :  { %s1674_s28 = sadd.f32 %s1974_s8, %s1561_s7 }
 0xc3a   :  { %v1676_v5 = vstv %s1674_s28 }
 0xc3b   :  { %v1677_v54 = vsel %vm1675_vm15, %v1676_v5, 0.0 }
 0xc3c   :  { %v1680_v1 = vsel %vm1678_vm6, %v1679_v53, %v1677_v54 }
 0xc3d   :  { %v1683_v15 = vsel %vm1681_vm7, %v1682_v23, %v1680_v1 }
 0xc3e   :  { %1684 = vst [vmem:[%s2770_s11] sm:$0x1] %v1683_v15 }

</bundles_post_ra>
